<compile_context>
chip_gen: v6e
topology: v6e:2x2x1
jax: 0.10.0
libtpu: 0.0.40
codegen_flags: <defaults>
</compile_context>

<pallas_src>
import functools

import jax
import jax.numpy as jnp
from jax.experimental import pallas as pl
from jax.experimental.pallas import tpu as pltpu

EPS = 1e-5                      # nn.BatchNorm2d default eps
LANES = 128                     # lane-dense channel padding
VMEM_LIMIT_BYTES = 32 * 1024 * 1024


# ---------------------------------------------------------------------------
# In-kernel 3x3 conv helper (stride 1).
# ---------------------------------------------------------------------------
def _conv3x3_rows(load3, w_ref, y_ref, st_ref, *, Ho, Wo, Cc, CP):
    """Stride-1 3x3 conv over an H-padded row source.

    W-direction taps are built by in-register shifts with zero fill (so the
    input only needs H padding).  For each output row `ho` it writes the f32
    conv result into y_ref[0, ho] and accumulates per-channel sum and
    sum-of-squares into st_ref[0] (for the batch-norm statistics).
    """

    def body(ho, carry):
        s, ss = carry
        xr = load3(ho)                                   # (3, Wo, Cc) bf16
        zrow = jnp.zeros((1, Cc), xr.dtype)
        acc = jnp.zeros((Wo, CP), jnp.float32)
        for kh in range(3):
            row = xr[kh]                                 # (Wo, Cc)
            left = jnp.concatenate([zrow, row[:-1, :]], axis=0)   # col offset -1
            right = jnp.concatenate([row[1:, :], zrow], axis=0)   # col offset +1
            for kw, tap in enumerate((left, row, right)):
                acc = acc + jnp.dot(tap, w_ref[kh * 3 + kw],
                                    preferred_element_type=jnp.float32)
        y_ref[0, ho] = acc
        s = s + jnp.sum(acc, axis=0, keepdims=True)
        ss = ss + jnp.sum(acc * acc, axis=0, keepdims=True)
        return s, ss

    zero = jnp.zeros((1, CP), jnp.float32)
    s, ss = jax.lax.fori_loop(0, Ho, body, (zero, zero))
    st_ref[0, 0:1, :] = s
    st_ref[0, 1:2, :] = ss


# ---------------------------------------------------------------------------
# Pallas kernels
# ---------------------------------------------------------------------------
def _conv_stats_kernel(x_ref, w_ref, y_ref, st_ref, *, Ho, Wo, Cc, CP):
    """conv1: x (H-padded NHWC, bf16) -> raw conv output + per-image BN stats."""
    _conv3x3_rows(lambda ho: x_ref[0, pl.ds(ho, 3)], w_ref, y_ref, st_ref,
                  Ho=Ho, Wo=Wo, Cc=Cc, CP=CP)


def _bn_relu_conv_stats_kernel(y1_ref, sc_ref, sh_ref, w_ref, y2_ref, st_ref,
                               act_ref, *, Ho, Wo, CP):
    """bn1(folded scale/shift) + ReLU into an H-padded bf16 VMEM scratch,
    then conv2 from that scratch + per-image BN stats."""
    zero_row = jnp.zeros((Wo, CP), act_ref.dtype)
    act_ref[0] = zero_row                  # H halo rows stay zero
    act_ref[Ho + 1] = zero_row
    sc = sc_ref[...]                       # (1, CP) folded scale
    sh = sh_ref[...]                       # (1, CP) folded shift

    def fill(r, carry):
        a = jnp.maximum(y1_ref[0, r] * sc + sh, 0.0)     # (Wo, CP) f32
        act_ref[r + 1] = a.astype(act_ref.dtype)
        return carry

    jax.lax.fori_loop(0, Ho, fill, 0)

    _conv3x3_rows(lambda ho: act_ref[pl.ds(ho, 3)], w_ref, y2_ref, st_ref,
                  Ho=Ho, Wo=Wo, Cc=CP, CP=CP)


def _bn_add_relu_kernel(y_ref, r_ref, sc_ref, sh_ref, o_ref):
    """out = relu(bn2(y2) + residual) on a lane-dense (TM, CP) tile."""
    o_ref[...] = jnp.maximum(
        y_ref[...] * sc_ref[...] + sh_ref[...] + r_ref[...], 0.0)


# ---------------------------------------------------------------------------
# pallas_call wrappers
# ---------------------------------------------------------------------------
def _conv_call(x_h, w_taps, *, N, Ho, Wo, Cc, CP):
    kernel = functools.partial(_conv_stats_kernel, Ho=Ho, Wo=Wo, Cc=Cc, CP=CP)
    return pl.pallas_call(
        kernel,
        out_shape=(jax.ShapeDtypeStruct((N, Ho, Wo, CP), jnp.float32),
                   jax.ShapeDtypeStruct((N, 2, CP), jnp.float32)),
        grid=(N,),
        in_specs=[
            pl.BlockSpec((1, Ho + 2, Wo, Cc), lambda i: (i, 0, 0, 0)),
            pl.BlockSpec((9, Cc, CP), lambda i: (0, 0, 0)),
        ],
        out_specs=(pl.BlockSpec((1, Ho, Wo, CP), lambda i: (i, 0, 0, 0)),
                   pl.BlockSpec((1, 2, CP), lambda i: (i, 0, 0))),
        compiler_params=pltpu.CompilerParams(
            dimension_semantics=("parallel",),
            vmem_limit_bytes=VMEM_LIMIT_BYTES),
    )(x_h, w_taps)


def _bn_conv_call(y1, sc, sh, w_taps, *, N, Ho, Wo, CP):
    kernel = functools.partial(_bn_relu_conv_stats_kernel, Ho=Ho, Wo=Wo, CP=CP)
    return pl.pallas_call(
        kernel,
        out_shape=(jax.ShapeDtypeStruct((N, Ho, Wo, CP), jnp.float32),
                   jax.ShapeDtypeStruct((N, 2, CP), jnp.float32)),
        grid=(N,),
        in_specs=[
            pl.BlockSpec((1, Ho, Wo, CP), lambda i: (i, 0, 0, 0)),
            pl.BlockSpec((1, CP), lambda i: (0, 0)),
            pl.BlockSpec((1, CP), lambda i: (0, 0)),
            pl.BlockSpec((9, CP, CP), lambda i: (0, 0, 0)),
        ],
        out_specs=(pl.BlockSpec((1, Ho, Wo, CP), lambda i: (i, 0, 0, 0)),
                   pl.BlockSpec((1, 2, CP), lambda i: (i, 0, 0))),
        scratch_shapes=[pltpu.VMEM((Ho + 2, Wo, CP), jnp.bfloat16)],
        compiler_params=pltpu.CompilerParams(
            dimension_semantics=("parallel",),
            vmem_limit_bytes=VMEM_LIMIT_BYTES),
    )(y1, sc, sh, w_taps)


def _bn_add_relu_call(y, res, sc, sh):
    M, CP = y.shape
    tm = M
    for t in (1024, 512, 256, 128, 64, 32, 16, 8):
        if M % t == 0:
            tm = t
            break
    return pl.pallas_call(
        _bn_add_relu_kernel,
        out_shape=jax.ShapeDtypeStruct((M, CP), jnp.float32),
        grid=(M // tm,),
        in_specs=[
            pl.BlockSpec((tm, CP), lambda i: (i, 0)),
            pl.BlockSpec((tm, CP), lambda i: (i, 0)),
            pl.BlockSpec((1, CP), lambda i: (0, 0)),
            pl.BlockSpec((1, CP), lambda i: (0, 0)),
        ],
        out_specs=pl.BlockSpec((tm, CP), lambda i: (i, 0)),
        compiler_params=pltpu.CompilerParams(
            dimension_semantics=("parallel",),
            vmem_limit_bytes=VMEM_LIMIT_BYTES),
    )(y, res, sc, sh)


# ---------------------------------------------------------------------------
# Plain-JAX glue: weight/param prep, BN-stat folding, layout conversion
# ---------------------------------------------------------------------------
def _conv_w_to_taps(w, cin_pad, cout_pad):
    """(Cout, Cin, 3, 3) -> (9, cin_pad, cout_pad) bf16, tap index k = kh*3+kw."""
    cout, cin = w.shape[0], w.shape[1]
    t = jnp.transpose(w, (2, 3, 1, 0)).reshape(9, cin, cout)
    t = jnp.pad(t, ((0, 0), (0, cin_pad - cin), (0, cout_pad - cout)))
    return t.astype(jnp.bfloat16)


def _pad_c(v, cp):
    return jnp.pad(v.astype(jnp.float32), (0, cp - v.shape[0]))


def _fold_bn(stats, gamma_p, beta_p, count):
    """Reduce per-image (sum, sumsq) and fold the affine into scale/shift."""
    s = jnp.sum(stats[:, 0, :], axis=0)
    ss = jnp.sum(stats[:, 1, :], axis=0)
    mean = s / count
    var = jnp.maximum(ss / count - mean * mean, 0.0)   # biased batch variance
    scale = gamma_p * jax.lax.rsqrt(var + EPS)
    shift = beta_p - mean * scale
    return scale.reshape(1, -1), shift.reshape(1, -1)


def basic_block_forward(x_nchw, params, domain_label, stride=1):
    """Pallas BasicBlock.forward(x, domain_label) with downsample=None."""
    if stride != 1:
        # TODO(synk): stride>1 (with a downsample branch) is not implemented;
        # the downsample=None residual add requires stride==1 anyway.
        raise NotImplementedError("stride must be 1 (downsample=None BasicBlock)")
    # TODO(synk): BatchNorm running-stats buffer updates (training side effect)
    # are not modeled; normalization uses current batch statistics only.

    d = domain_label[0]
    N, Cin, H, W = x_nchw.shape
    Cout = params["conv1_w"].shape[0]
    if Cin != Cout:
        raise ValueError("downsample=None BasicBlock requires inplanes == planes")
    CP = ((Cout + LANES - 1) // LANES) * LANES

    x_nhwc = jnp.transpose(x_nchw, (0, 2, 3, 1)).astype(jnp.float32)
    # H-padded bf16 input for conv1 (W padding is handled in-kernel).
    x_h = jnp.pad(x_nhwc, ((0, 0), (1, 1), (0, 0), (0, 0))).astype(jnp.bfloat16)

    w1 = _conv_w_to_taps(params["conv1_w"], Cin, CP)
    w2 = _conv_w_to_taps(params["conv2_w"], CP, CP)

    # conv1 + per-image BN partial stats
    y1, st1 = _conv_call(x_h, w1, N=N, Ho=H, Wo=W, Cc=Cin, CP=CP)
    sc1, sh1 = _fold_bn(st1, _pad_c(params["bn1_gamma"][d], CP),
                        _pad_c(params["bn1_beta"][d], CP), N * H * W)

    # bn1 + relu (in VMEM) + conv2 + per-image BN partial stats
    y2, st2 = _bn_conv_call(y1, sc1, sh1, w2, N=N, Ho=H, Wo=W, CP=CP)
    sc2, sh2 = _fold_bn(st2, _pad_c(params["bn2_gamma"][d], CP),
                        _pad_c(params["bn2_beta"][d], CP), N * H * W)

    # bn2 + residual add + relu (lane-dense, row-tiled)
    res = jnp.pad(x_nhwc, ((0, 0), (0, 0), (0, 0), (0, CP - Cin)))
    res = res.reshape(N * H * W, CP)
    out = _bn_add_relu_call(y2.reshape(N * H * W, CP), res, sc2, sh2)

    out_nchw = jnp.transpose(out[:, :Cout].reshape(N, H, W, Cout), (0, 3, 1, 2))
    return out_nchw, domain_label


# ---------------------------------------------------------------------------
# Pure-JAX reference mirroring the kernel's numerics (bf16 conv operands with
# f32 accumulation, training-mode batch statistics) for the correctness check.
# ---------------------------------------------------------------------------
def _ref_forward(x, params, domain_label):
    d = domain_label[0]

    def conv(z, w):
        return jax.lax.conv_general_dilated(
            z.astype(jnp.bfloat16), w.astype(jnp.bfloat16),
            window_strides=(1, 1), padding=((1, 1), (1, 1)),
            dimension_numbers=("NCHW", "OIHW", "NCHW"),
            preferred_element_type=jnp.float32)

    def bn(y, gamma, beta):
        mean = jnp.mean(y, axis=(0, 2, 3), keepdims=True)
        var = jnp.mean(jnp.square(y - mean), axis=(0, 2, 3), keepdims=True)
        return ((y - mean) * jax.lax.rsqrt(var + EPS)
                * gamma.reshape(1, -1, 1, 1) + beta.reshape(1, -1, 1, 1))

    out = conv(x, params["conv1_w"])
    out = jax.nn.relu(bn(out, params["bn1_gamma"][d], params["bn1_beta"][d]))
    out = conv(out, params["conv2_w"])
    out = bn(out, params["bn2_gamma"][d], params["bn2_beta"][d]) + x
    return jax.nn.relu(out)


# ---------------------------------------------------------------------------
if __name__ == "__main__":
    key = jax.random.PRNGKey(0)
    kx, kw1, kw2, kg1, kb1, kg2, kb2 = jax.random.split(key, 7)

    N, C, H, W = 2, 4, 16, 16        # inplanes == planes == 4, stride=1
    planes, num_bns = 4, 2

    x = jax.random.normal(kx, (N, C, H, W), jnp.float32)
    domain_label = jnp.zeros((N,), dtype=jnp.int32)   # all samples use BN bank 0

    params = {
        "conv1_w": 0.1 * jax.random.normal(kw1, (planes, C, 3, 3), jnp.float32),
        "conv2_w": 0.1 * jax.random.normal(kw2, (planes, planes, 3, 3), jnp.float32),
        "bn1_gamma": 1.0 + 0.1 * jax.random.normal(kg1, (num_bns, planes), jnp.float32),
        "bn1_beta": 0.1 * jax.random.normal(kb1, (num_bns, planes), jnp.float32),
        "bn2_gamma": 1.0 + 0.1 * jax.random.normal(kg2, (num_bns, planes), jnp.float32),
        "bn2_beta": 0.1 * jax.random.normal(kb2, (num_bns, planes), jnp.float32),
    }

    fwd = jax.jit(functools.partial(basic_block_forward, stride=1))
    out, dl = fwd(x, params, domain_label)
    out = jax.block_until_ready(out)

    ref = _ref_forward(x, params, domain_label)
    if not bool(jnp.allclose(out, ref, atol=1e-2, rtol=1e-2)):
        max_err = float(jnp.max(jnp.abs(out - ref)))
        raise AssertionError(
            f"Pallas BasicBlock output mismatch vs reference (max err {max_err:.3e})")

    print("KERNEL_OK")
</pallas_src>

<mosaic_0001>
module attributes {stable_mosaic.version = 11 : i64} {
  func.func @_conv_stats_kernel(%arg0: i32, %arg1: memref<1x18x16x4xbf16, #tpu.memory_space<vmem>>, %arg2: memref<9x4x128xbf16, #tpu.memory_space<vmem>>, %arg3: memref<1x16x16x128xf32, #tpu.memory_space<vmem>>, %arg4: memref<1x2x128xf32, #tpu.memory_space<vmem>>) attributes {dimension_semantics = [#tpu.dimension_semantics<parallel>], iteration_bounds = array<i64: 2>, scalar_prefetch = 0 : i64, scratch_operands = 0 : i64, tpu.core_type = #tpu.core_type<tc>, window_params = [{transform_indices = @transform_0, window_bounds = array<i64: 1, 18, 16, 4>}, {pipeline_mode = #tpu.pipeline_mode<synchronous>, transform_indices = @transform_1, window_bounds = array<i64: 9, 4, 128>}, {transform_indices = @transform_2, window_bounds = array<i64: 1, 16, 16, 128>}, {transform_indices = @transform_3, window_bounds = array<i64: 1, 2, 128>}]} {
    %cst = arith.constant 0.000000e+00 : f32
    %0 = vector.broadcast %cst : f32 to vector<1x128xf32>
    %c0_i32 = arith.constant 0 : i32
    %c16_i32 = arith.constant 16 : i32
    %1 = arith.addi %c0_i32, %c16_i32 : i32
    %c1_i32 = arith.constant 1 : i32
    %2:2 = scf.for %arg5 = %c0_i32 to %1 step %c1_i32 iter_args(%arg6 = %0, %arg7 = %0) -> (vector<1x128xf32>, vector<1x128xf32>)  : i32 {
      %c0_5 = arith.constant 0 : index
      %9 = arith.index_cast %arg5 : i32 to index
      %c0_6 = arith.constant 0 : index
      %c0_7 = arith.constant 0 : index
      %10 = vector.load %arg1[%c0_5, %9, %c0_6, %c0_7] : memref<1x18x16x4xbf16, #tpu.memory_space<vmem>>, vector<1x3x16x4xbf16>
      %11 = vector.shape_cast %10 : vector<1x3x16x4xbf16> to vector<3x16x4xbf16>
      %cst_8 = arith.constant 0.000000e+00 : bf16
      %12 = vector.broadcast %cst_8 : bf16 to vector<1x4xbf16>
      %cst_9 = arith.constant 0.000000e+00 : f32
      %13 = vector.broadcast %cst_9 : f32 to vector<16x128xf32>
      %14 = vector.extract_strided_slice %11 {offsets = [0, 0, 0], sizes = [1, 16, 4], strides = [1, 1, 1]} : vector<3x16x4xbf16> to vector<1x16x4xbf16>
      %15 = vector.shape_cast %14 : vector<1x16x4xbf16> to vector<16x4xbf16>
      %16 = vector.extract_strided_slice %15 {offsets = [0, 0], sizes = [15, 4], strides = [1, 1]} : vector<16x4xbf16> to vector<15x4xbf16>
      %17 = tpu.concatenate %12, %16 in 0 : vector<1x4xbf16>, vector<15x4xbf16> -> vector<16x4xbf16>
      %18 = vector.extract_strided_slice %15 {offsets = [1, 0], sizes = [15, 4], strides = [1, 1]} : vector<16x4xbf16> to vector<15x4xbf16>
      %19 = tpu.concatenate %18, %12 in 0 : vector<15x4xbf16>, vector<1x4xbf16> -> vector<16x4xbf16>
      %c0_10 = arith.constant 0 : index
      %c0_11 = arith.constant 0 : index
      %c0_12 = arith.constant 0 : index
      %20 = vector.load %arg2[%c0_10, %c0_11, %c0_12] : memref<9x4x128xbf16, #tpu.memory_space<vmem>>, vector<1x4x128xbf16>
      %21 = vector.shape_cast %20 : vector<1x4x128xbf16> to vector<4x128xbf16>
      %cst_13 = arith.constant dense<0.000000e+00> : vector<16x128xf32>
      %22 = tpu.matmul %17, %21, %cst_13 {dimension_numbers = #tpu.dot_dimension_numbers<[1], [0], [0], [1], [0, 0, 1, 1], [], []>} : vector<16x4xbf16>, vector<4x128xbf16>, vector<16x128xf32> -> vector<16x128xf32>
      %23 = arith.addf %13, %22 : vector<16x128xf32>
      %c1_14 = arith.constant 1 : index
      %c0_15 = arith.constant 0 : index
      %c0_16 = arith.constant 0 : index
      %24 = vector.load %arg2[%c1_14, %c0_15, %c0_16] : memref<9x4x128xbf16, #tpu.memory_space<vmem>>, vector<1x4x128xbf16>
      %25 = vector.shape_cast %24 : vector<1x4x128xbf16> to vector<4x128xbf16>
      %cst_17 = arith.constant dense<0.000000e+00> : vector<16x128xf32>
      %26 = tpu.matmul %15, %25, %cst_17 {dimension_numbers = #tpu.dot_dimension_numbers<[1], [0], [0], [1], [0, 0, 1, 1], [], []>} : vector<16x4xbf16>, vector<4x128xbf16>, vector<16x128xf32> -> vector<16x128xf32>
      %27 = arith.addf %23, %26 : vector<16x128xf32>
      %c2 = arith.constant 2 : index
      %c0_18 = arith.constant 0 : index
      %c0_19 = arith.constant 0 : index
      %28 = vector.load %arg2[%c2, %c0_18, %c0_19] : memref<9x4x128xbf16, #tpu.memory_space<vmem>>, vector<1x4x128xbf16>
      %29 = vector.shape_cast %28 : vector<1x4x128xbf16> to vector<4x128xbf16>
      %cst_20 = arith.constant dense<0.000000e+00> : vector<16x128xf32>
      %30 = tpu.matmul %19, %29, %cst_20 {dimension_numbers = #tpu.dot_dimension_numbers<[1], [0], [0], [1], [0, 0, 1, 1], [], []>} : vector<16x4xbf16>, vector<4x128xbf16>, vector<16x128xf32> -> vector<16x128xf32>
      %31 = arith.addf %27, %30 : vector<16x128xf32>
      %32 = vector.extract_strided_slice %11 {offsets = [1, 0, 0], sizes = [1, 16, 4], strides = [1, 1, 1]} : vector<3x16x4xbf16> to vector<1x16x4xbf16>
      %33 = vector.shape_cast %32 : vector<1x16x4xbf16> to vector<16x4xbf16>
      %34 = vector.extract_strided_slice %33 {offsets = [0, 0], sizes = [15, 4], strides = [1, 1]} : vector<16x4xbf16> to vector<15x4xbf16>
      %35 = tpu.concatenate %12, %34 in 0 : vector<1x4xbf16>, vector<15x4xbf16> -> vector<16x4xbf16>
      %36 = vector.extract_strided_slice %33 {offsets = [1, 0], sizes = [15, 4], strides = [1, 1]} : vector<16x4xbf16> to vector<15x4xbf16>
      %37 = tpu.concatenate %36, %12 in 0 : vector<15x4xbf16>, vector<1x4xbf16> -> vector<16x4xbf16>
      %c3 = arith.constant 3 : index
      %c0_21 = arith.constant 0 : index
      %c0_22 = arith.constant 0 : index
      %38 = vector.load %arg2[%c3, %c0_21, %c0_22] : memref<9x4x128xbf16, #tpu.memory_space<vmem>>, vector<1x4x128xbf16>
      %39 = vector.shape_cast %38 : vector<1x4x128xbf16> to vector<4x128xbf16>
      %cst_23 = arith.constant dense<0.000000e+00> : vector<16x128xf32>
      %40 = tpu.matmul %35, %39, %cst_23 {dimension_numbers = #tpu.dot_dimension_numbers<[1], [0], [0], [1], [0, 0, 1, 1], [], []>} : vector<16x4xbf16>, vector<4x128xbf16>, vector<16x128xf32> -> vector<16x128xf32>
      %41 = arith.addf %31, %40 : vector<16x128xf32>
      %c4 = arith.constant 4 : index
      %c0_24 = arith.constant 0 : index
      %c0_25 = arith.constant 0 : index
      %42 = vector.load %arg2[%c4, %c0_24, %c0_25] : memref<9x4x128xbf16, #tpu.memory_space<vmem>>, vector<1x4x128xbf16>
      %43 = vector.shape_cast %42 : vector<1x4x128xbf16> to vector<4x128xbf16>
      %cst_26 = arith.constant dense<0.000000e+00> : vector<16x128xf32>
      %44 = tpu.matmul %33, %43, %cst_26 {dimension_numbers = #tpu.dot_dimension_numbers<[1], [0], [0], [1], [0, 0, 1, 1], [], []>} : vector<16x4xbf16>, vector<4x128xbf16>, vector<16x128xf32> -> vector<16x128xf32>
      %45 = arith.addf %41, %44 : vector<16x128xf32>
      %c5 = arith.constant 5 : index
      %c0_27 = arith.constant 0 : index
      %c0_28 = arith.constant 0 : index
      %46 = vector.load %arg2[%c5, %c0_27, %c0_28] : memref<9x4x128xbf16, #tpu.memory_space<vmem>>, vector<1x4x128xbf16>
      %47 = vector.shape_cast %46 : vector<1x4x128xbf16> to vector<4x128xbf16>
      %cst_29 = arith.constant dense<0.000000e+00> : vector<16x128xf32>
      %48 = tpu.matmul %37, %47, %cst_29 {dimension_numbers = #tpu.dot_dimension_numbers<[1], [0], [0], [1], [0, 0, 1, 1], [], []>} : vector<16x4xbf16>, vector<4x128xbf16>, vector<16x128xf32> -> vector<16x128xf32>
      %49 = arith.addf %45, %48 : vector<16x128xf32>
      %50 = vector.extract_strided_slice %11 {offsets = [2, 0, 0], sizes = [1, 16, 4], strides = [1, 1, 1]} : vector<3x16x4xbf16> to vector<1x16x4xbf16>
      %51 = vector.shape_cast %50 : vector<1x16x4xbf16> to vector<16x4xbf16>
      %52 = vector.extract_strided_slice %51 {offsets = [0, 0], sizes = [15, 4], strides = [1, 1]} : vector<16x4xbf16> to vector<15x4xbf16>
      %53 = tpu.concatenate %12, %52 in 0 : vector<1x4xbf16>, vector<15x4xbf16> -> vector<16x4xbf16>
      %54 = vector.extract_strided_slice %51 {offsets = [1, 0], sizes = [15, 4], strides = [1, 1]} : vector<16x4xbf16> to vector<15x4xbf16>
      %55 = tpu.concatenate %54, %12 in 0 : vector<15x4xbf16>, vector<1x4xbf16> -> vector<16x4xbf16>
      %c6 = arith.constant 6 : index
      %c0_30 = arith.constant 0 : index
      %c0_31 = arith.constant 0 : index
      %56 = vector.load %arg2[%c6, %c0_30, %c0_31] : memref<9x4x128xbf16, #tpu.memory_space<vmem>>, vector<1x4x128xbf16>
      %57 = vector.shape_cast %56 : vector<1x4x128xbf16> to vector<4x128xbf16>
      %cst_32 = arith.constant dense<0.000000e+00> : vector<16x128xf32>
      %58 = tpu.matmul %53, %57, %cst_32 {dimension_numbers = #tpu.dot_dimension_numbers<[1], [0], [0], [1], [0, 0, 1, 1], [], []>} : vector<16x4xbf16>, vector<4x128xbf16>, vector<16x128xf32> -> vector<16x128xf32>
      %59 = arith.addf %49, %58 : vector<16x128xf32>
      %c7 = arith.constant 7 : index
      %c0_33 = arith.constant 0 : index
      %c0_34 = arith.constant 0 : index
      %60 = vector.load %arg2[%c7, %c0_33, %c0_34] : memref<9x4x128xbf16, #tpu.memory_space<vmem>>, vector<1x4x128xbf16>
      %61 = vector.shape_cast %60 : vector<1x4x128xbf16> to vector<4x128xbf16>
      %cst_35 = arith.constant dense<0.000000e+00> : vector<16x128xf32>
      %62 = tpu.matmul %51, %61, %cst_35 {dimension_numbers = #tpu.dot_dimension_numbers<[1], [0], [0], [1], [0, 0, 1, 1], [], []>} : vector<16x4xbf16>, vector<4x128xbf16>, vector<16x128xf32> -> vector<16x128xf32>
      %63 = arith.addf %59, %62 : vector<16x128xf32>
      %c8 = arith.constant 8 : index
      %c0_36 = arith.constant 0 : index
      %c0_37 = arith.constant 0 : index
      %64 = vector.load %arg2[%c8, %c0_36, %c0_37] : memref<9x4x128xbf16, #tpu.memory_space<vmem>>, vector<1x4x128xbf16>
      %65 = vector.shape_cast %64 : vector<1x4x128xbf16> to vector<4x128xbf16>
      %cst_38 = arith.constant dense<0.000000e+00> : vector<16x128xf32>
      %66 = tpu.matmul %55, %65, %cst_38 {dimension_numbers = #tpu.dot_dimension_numbers<[1], [0], [0], [1], [0, 0, 1, 1], [], []>} : vector<16x4xbf16>, vector<4x128xbf16>, vector<16x128xf32> -> vector<16x128xf32>
      %67 = arith.addf %63, %66 : vector<16x128xf32>
      %c0_39 = arith.constant 0 : index
      %68 = arith.index_cast %arg5 : i32 to index
      %c0_40 = arith.constant 0 : index
      %c0_41 = arith.constant 0 : index
      %69 = vector.load %arg3[%c0_39, %68, %c0_40, %c0_41] : memref<1x16x16x128xf32, #tpu.memory_space<vmem>>, vector<1x1x16x128xf32>
      %70 = vector.shape_cast %69 : vector<1x1x16x128xf32> to vector<16x128xf32>
      %71 = vector.shape_cast %67 : vector<16x128xf32> to vector<1x1x16x128xf32>
      tpu.vector_store %arg3[%c0_39, %68, %c0_40, %c0_41], %71 {strides = array<i32>} : memref<1x16x16x128xf32, #tpu.memory_space<vmem>>, vector<1x1x16x128xf32>,
      %cst_42 = arith.constant dense<0.000000e+00> : vector<128xf32>
      %72 = vector.multi_reduction <add>, %67, %cst_42 [0] : vector<16x128xf32> to vector<128xf32>
      %73 = vector.shape_cast %72 : vector<128xf32> to vector<1x128xf32>
      %74 = arith.addf %arg6, %73 : vector<1x128xf32>
      %75 = arith.mulf %67, %67 : vector<16x128xf32>
      %cst_43 = arith.constant dense<0.000000e+00> : vector<128xf32>
      %76 = vector.multi_reduction <add>, %75, %cst_43 [0] : vector<16x128xf32> to vector<128xf32>
      %77 = vector.shape_cast %76 : vector<128xf32> to vector<1x128xf32>
      %78 = arith.addf %arg7, %77 : vector<1x128xf32>
      scf.yield %74, %78 : vector<1x128xf32>, vector<1x128xf32>
    }
    %c16_i32_0 = arith.constant 16 : i32
    %c0 = arith.constant 0 : index
    %c0_1 = arith.constant 0 : index
    %c0_2 = arith.constant 0 : index
    %3 = vector.load %arg4[%c0, %c0_1, %c0_2] : memref<1x2x128xf32, #tpu.memory_space<vmem>>, vector<1x1x128xf32>
    %4 = vector.shape_cast %3 : vector<1x1x128xf32> to vector<1x128xf32>
    %5 = vector.shape_cast %2#0 : vector<1x128xf32> to vector<1x1x128xf32>
    tpu.vector_store %arg4[%c0, %c0_1, %c0_2], %5 {strides = array<i32>} : memref<1x2x128xf32, #tpu.memory_space<vmem>>, vector<1x1x128xf32>,
    %c0_3 = arith.constant 0 : index
    %c1 = arith.constant 1 : index
    %c0_4 = arith.constant 0 : index
    %6 = vector.load %arg4[%c0_3, %c1, %c0_4] : memref<1x2x128xf32, #tpu.memory_space<vmem>>, vector<1x1x128xf32>
    %7 = vector.shape_cast %6 : vector<1x1x128xf32> to vector<1x128xf32>
    %8 = vector.shape_cast %2#1 : vector<1x128xf32> to vector<1x1x128xf32>
    tpu.vector_store %arg4[%c0_3, %c1, %c0_4], %8 {strides = array<i32>} : memref<1x2x128xf32, #tpu.memory_space<vmem>>, vector<1x1x128xf32>,
    return
  }
  func.func @transform_0(%arg0: i32) -> (i32, i32, i32, i32) {
    %c0_i32 = arith.constant 0 : i32
    %c0_i32_0 = arith.constant 0 : i32
    %c0_i32_1 = arith.constant 0 : i32
    %c0_i32_2 = arith.constant 0 : i32
    return %arg0, %c0_i32, %c0_i32_0, %c0_i32_1 : i32, i32, i32, i32
  }
  func.func @transform_1(%arg0: i32) -> (i32, i32, i32) {
    %c0_i32 = arith.constant 0 : i32
    %c0_i32_0 = arith.constant 0 : i32
    %c0_i32_1 = arith.constant 0 : i32
    %c0_i32_2 = arith.constant 0 : i32
    return %c0_i32, %c0_i32_0, %c0_i32_1 : i32, i32, i32
  }
  func.func @transform_2(%arg0: i32) -> (i32, i32, i32, i32) {
    %c0_i32 = arith.constant 0 : i32
    %c0_i32_0 = arith.constant 0 : i32
    %c0_i32_1 = arith.constant 0 : i32
    %c0_i32_2 = arith.constant 0 : i32
    return %arg0, %c0_i32, %c0_i32_0, %c0_i32_1 : i32, i32, i32, i32
  }
  func.func @transform_3(%arg0: i32) -> (i32, i32, i32) {
    %c0_i32 = arith.constant 0 : i32
    %c0_i32_0 = arith.constant 0 : i32
    %c0_i32_1 = arith.constant 0 : i32
    return %arg0, %c0_i32, %c0_i32_0 : i32, i32, i32
  }
}

module attributes {stable_mosaic.version = 11 : i64} {
  func.func @_bn_relu_conv_stats_kernel(%arg0: i32, %arg1: memref<1x16x16x128xf32, #tpu.memory_space<vmem>>, %arg2: memref<1x128xf32, #tpu.memory_space<vmem>>, %arg3: memref<1x128xf32, #tpu.memory_space<vmem>>, %arg4: memref<9x128x128xbf16, #tpu.memory_space<vmem>>, %arg5: memref<1x16x16x128xf32, #tpu.memory_space<vmem>>, %arg6: memref<1x2x128xf32, #tpu.memory_space<vmem>>, %arg7: memref<18x16x128xbf16, #tpu.memory_space<vmem>>) attributes {dimension_semantics = [#tpu.dimension_semantics<parallel>], iteration_bounds = array<i64: 2>, scalar_prefetch = 0 : i64, scratch_operands = 1 : i64, tpu.core_type = #tpu.core_type<tc>, window_params = [{transform_indices = @transform_0, window_bounds = array<i64: 1, 16, 16, 128>}, {pipeline_mode = #tpu.pipeline_mode<synchronous>, transform_indices = @transform_1, window_bounds = array<i64: 1, 128>}, {pipeline_mode = #tpu.pipeline_mode<synchronous>, transform_indices = @transform_2, window_bounds = array<i64: 1, 128>}, {pipeline_mode = #tpu.pipeline_mode<synchronous>, transform_indices = @transform_3, window_bounds = array<i64: 9, 128, 128>}, {transform_indices = @transform_4, window_bounds = array<i64: 1, 16, 16, 128>}, {transform_indices = @transform_5, window_bounds = array<i64: 1, 2, 128>}]} {
    %cst = arith.constant 0.000000e+00 : bf16
    %0 = vector.broadcast %cst : bf16 to vector<16x128xbf16>
    %c0 = arith.constant 0 : index
    %c0_0 = arith.constant 0 : index
    %c0_1 = arith.constant 0 : index
    %1 = vector.load %arg7[%c0, %c0_0, %c0_1] : memref<18x16x128xbf16, #tpu.memory_space<vmem>>, vector<1x16x128xbf16>
    %2 = vector.shape_cast %1 : vector<1x16x128xbf16> to vector<16x128xbf16>
    %3 = vector.shape_cast %0 : vector<16x128xbf16> to vector<1x16x128xbf16>
    tpu.vector_store %arg7[%c0, %c0_0, %c0_1], %3 {strides = array<i32>} : memref<18x16x128xbf16, #tpu.memory_space<vmem>>, vector<1x16x128xbf16>,
    %c17 = arith.constant 17 : index
    %c0_2 = arith.constant 0 : index
    %c0_3 = arith.constant 0 : index
    %4 = vector.load %arg7[%c17, %c0_2, %c0_3] : memref<18x16x128xbf16, #tpu.memory_space<vmem>>, vector<1x16x128xbf16>
    %5 = vector.shape_cast %4 : vector<1x16x128xbf16> to vector<16x128xbf16>
    %6 = vector.shape_cast %0 : vector<16x128xbf16> to vector<1x16x128xbf16>
    tpu.vector_store %arg7[%c17, %c0_2, %c0_3], %6 {strides = array<i32>} : memref<18x16x128xbf16, #tpu.memory_space<vmem>>, vector<1x16x128xbf16>,
    %c0_4 = arith.constant 0 : index
    %c0_5 = arith.constant 0 : index
    %7 = vector.load %arg2[%c0_4, %c0_5] : memref<1x128xf32, #tpu.memory_space<vmem>>, vector<1x128xf32>
    %c0_6 = arith.constant 0 : index
    %c0_7 = arith.constant 0 : index
    %8 = vector.load %arg3[%c0_6, %c0_7] : memref<1x128xf32, #tpu.memory_space<vmem>>, vector<1x128xf32>
    %c0_i32 = arith.constant 0 : i32
    %c16_i32 = arith.constant 16 : i32
    %9 = arith.addi %c0_i32, %c16_i32 : i32
    %c1_i32 = arith.constant 1 : i32
    scf.for %arg8 = %c0_i32 to %9 step %c1_i32  : i32 {
      %c0_19 = arith.constant 0 : index
      %19 = arith.index_cast %arg8 : i32 to index
      %c0_20 = arith.constant 0 : index
      %c0_21 = arith.constant 0 : index
      %20 = vector.load %arg1[%c0_19, %19, %c0_20, %c0_21] : memref<1x16x16x128xf32, #tpu.memory_space<vmem>>, vector<1x1x16x128xf32>
      %21 = vector.shape_cast %20 : vector<1x1x16x128xf32> to vector<16x128xf32>
      %22 = vector.broadcast %7 : vector<1x128xf32> to vector<16x128xf32>
      %23 = arith.mulf %21, %22 : vector<16x128xf32>
      %24 = vector.broadcast %8 : vector<1x128xf32> to vector<16x128xf32>
      %25 = arith.addf %23, %24 : vector<16x128xf32>
      %cst_22 = arith.constant 0.000000e+00 : f32
      %26 = vector.broadcast %cst_22 : f32 to vector<16x128xf32>
      %27 = arith.maximumf %25, %26 : vector<16x128xf32>
      %28 = arith.truncf %27 : vector<16x128xf32> to vector<16x128xbf16>
      %c1_i32_23 = arith.constant 1 : i32
      %29 = arith.addi %arg8, %c1_i32_23 : i32
      %30 = arith.index_cast %29 : i32 to index
      %c0_24 = arith.constant 0 : index
      %c0_25 = arith.constant 0 : index
      %31 = vector.load %arg7[%30, %c0_24, %c0_25] : memref<18x16x128xbf16, #tpu.memory_space<vmem>>, vector<1x16x128xbf16>
      %32 = vector.shape_cast %31 : vector<1x16x128xbf16> to vector<16x128xbf16>
      %33 = vector.shape_cast %28 : vector<16x128xbf16> to vector<1x16x128xbf16>
      tpu.vector_store %arg7[%30, %c0_24, %c0_25], %33 {strides = array<i32>} : memref<18x16x128xbf16, #tpu.memory_space<vmem>>, vector<1x16x128xbf16>,
    }
    %c16_i32_8 = arith.constant 16 : i32
    %cst_9 = arith.constant 0.000000e+00 : f32
    %10 = vector.broadcast %cst_9 : f32 to vector<1x128xf32>
    %c0_i32_10 = arith.constant 0 : i32
    %c16_i32_11 = arith.constant 16 : i32
    %11 = arith.addi %c0_i32_10, %c16_i32_11 : i32
    %c1_i32_12 = arith.constant 1 : i32
    %12:2 = scf.for %arg8 = %c0_i32_10 to %11 step %c1_i32_12 iter_args(%arg9 = %10, %arg10 = %10) -> (vector<1x128xf32>, vector<1x128xf32>)  : i32 {
      %19 = arith.index_cast %arg8 : i32 to index
      %c0_19 = arith.constant 0 : index
      %c0_20 = arith.constant 0 : index
      %20 = vector.load %arg7[%19, %c0_19, %c0_20] : memref<18x16x128xbf16, #tpu.memory_space<vmem>>, vector<3x16x128xbf16>
      %cst_21 = arith.constant 0.000000e+00 : bf16
      %21 = vector.broadcast %cst_21 : bf16 to vector<1x128xbf16>
      %cst_22 = arith.constant 0.000000e+00 : f32
      %22 = vector.broadcast %cst_22 : f32 to vector<16x128xf32>
      %23 = vector.extract_strided_slice %20 {offsets = [0, 0, 0], sizes = [1, 16, 128], strides = [1, 1, 1]} : vector<3x16x128xbf16> to vector<1x16x128xbf16>
      %24 = vector.shape_cast %23 : vector<1x16x128xbf16> to vector<16x128xbf16>
      %25 = vector.extract_strided_slice %24 {offsets = [0, 0], sizes = [15, 128], strides = [1, 1]} : vector<16x128xbf16> to vector<15x128xbf16>
      %26 = tpu.concatenate %21, %25 in 0 : vector<1x128xbf16>, vector<15x128xbf16> -> vector<16x128xbf16>
      %27 = vector.extract_strided_slice %24 {offsets = [1, 0], sizes = [15, 128], strides = [1, 1]} : vector<16x128xbf16> to vector<15x128xbf16>
      %28 = tpu.concatenate %27, %21 in 0 : vector<15x128xbf16>, vector<1x128xbf16> -> vector<16x128xbf16>
      %c0_23 = arith.constant 0 : index
      %c0_24 = arith.constant 0 : index
      %c0_25 = arith.constant 0 : index
      %29 = vector.load %arg4[%c0_23, %c0_24, %c0_25] : memref<9x128x128xbf16, #tpu.memory_space<vmem>>, vector<1x128x128xbf16>
      %30 = vector.shape_cast %29 : vector<1x128x128xbf16> to vector<128x128xbf16>
      %cst_26 = arith.constant dense<0.000000e+00> : vector<16x128xf32>
      %31 = tpu.matmul %26, %30, %cst_26 {dimension_numbers = #tpu.dot_dimension_numbers<[1], [0], [0], [1], [0, 0, 1, 1], [], []>} : vector<16x128xbf16>, vector<128x128xbf16>, vector<16x128xf32> -> vector<16x128xf32>
      %32 = arith.addf %22, %31 : vector<16x128xf32>
      %c1_27 = arith.constant 1 : index
      %c0_28 = arith.constant 0 : index
      %c0_29 = arith.constant 0 : index
      %33 = vector.load %arg4[%c1_27, %c0_28, %c0_29] : memref<9x128x128xbf16, #tpu.memory_space<vmem>>, vector<1x128x128xbf16>
      %34 = vector.shape_cast %33 : vector<1x128x128xbf16> to vector<128x128xbf16>
      %cst_30 = arith.constant dense<0.000000e+00> : vector<16x128xf32>
      %35 = tpu.matmul %24, %34, %cst_30 {dimension_numbers = #tpu.dot_dimension_numbers<[1], [0], [0], [1], [0, 0, 1, 1], [], []>} : vector<16x128xbf16>, vector<128x128xbf16>, vector<16x128xf32> -> vector<16x128xf32>
      %36 = arith.addf %32, %35 : vector<16x128xf32>
      %c2 = arith.constant 2 : index
      %c0_31 = arith.constant 0 : index
      %c0_32 = arith.constant 0 : index
      %37 = vector.load %arg4[%c2, %c0_31, %c0_32] : memref<9x128x128xbf16, #tpu.memory_space<vmem>>, vector<1x128x128xbf16>
      %38 = vector.shape_cast %37 : vector<1x128x128xbf16> to vector<128x128xbf16>
      %cst_33 = arith.constant dense<0.000000e+00> : vector<16x128xf32>
      %39 = tpu.matmul %28, %38, %cst_33 {dimension_numbers = #tpu.dot_dimension_numbers<[1], [0], [0], [1], [0, 0, 1, 1], [], []>} : vector<16x128xbf16>, vector<128x128xbf16>, vector<16x128xf32> -> vector<16x128xf32>
      %40 = arith.addf %36, %39 : vector<16x128xf32>
      %41 = vector.extract_strided_slice %20 {offsets = [1, 0, 0], sizes = [1, 16, 128], strides = [1, 1, 1]} : vector<3x16x128xbf16> to vector<1x16x128xbf16>
      %42 = vector.shape_cast %41 : vector<1x16x128xbf16> to vector<16x128xbf16>
      %43 = vector.extract_strided_slice %42 {offsets = [0, 0], sizes = [15, 128], strides = [1, 1]} : vector<16x128xbf16> to vector<15x128xbf16>
      %44 = tpu.concatenate %21, %43 in 0 : vector<1x128xbf16>, vector<15x128xbf16> -> vector<16x128xbf16>
      %45 = vector.extract_strided_slice %42 {offsets = [1, 0], sizes = [15, 128], strides = [1, 1]} : vector<16x128xbf16> to vector<15x128xbf16>
      %46 = tpu.concatenate %45, %21 in 0 : vector<15x128xbf16>, vector<1x128xbf16> -> vector<16x128xbf16>
      %c3 = arith.constant 3 : index
      %c0_34 = arith.constant 0 : index
      %c0_35 = arith.constant 0 : index
      %47 = vector.load %arg4[%c3, %c0_34, %c0_35] : memref<9x128x128xbf16, #tpu.memory_space<vmem>>, vector<1x128x128xbf16>
      %48 = vector.shape_cast %47 : vector<1x128x128xbf16> to vector<128x128xbf16>
      %cst_36 = arith.constant dense<0.000000e+00> : vector<16x128xf32>
      %49 = tpu.matmul %44, %48, %cst_36 {dimension_numbers = #tpu.dot_dimension_numbers<[1], [0], [0], [1], [0, 0, 1, 1], [], []>} : vector<16x128xbf16>, vector<128x128xbf16>, vector<16x128xf32> -> vector<16x128xf32>
      %50 = arith.addf %40, %49 : vector<16x128xf32>
      %c4 = arith.constant 4 : index
      %c0_37 = arith.constant 0 : index
      %c0_38 = arith.constant 0 : index
      %51 = vector.load %arg4[%c4, %c0_37, %c0_38] : memref<9x128x128xbf16, #tpu.memory_space<vmem>>, vector<1x128x128xbf16>
      %52 = vector.shape_cast %51 : vector<1x128x128xbf16> to vector<128x128xbf16>
      %cst_39 = arith.constant dense<0.000000e+00> : vector<16x128xf32>
      %53 = tpu.matmul %42, %52, %cst_39 {dimension_numbers = #tpu.dot_dimension_numbers<[1], [0], [0], [1], [0, 0, 1, 1], [], []>} : vector<16x128xbf16>, vector<128x128xbf16>, vector<16x128xf32> -> vector<16x128xf32>
      %54 = arith.addf %50, %53 : vector<16x128xf32>
      %c5 = arith.constant 5 : index
      %c0_40 = arith.constant 0 : index
      %c0_41 = arith.constant 0 : index
      %55 = vector.load %arg4[%c5, %c0_40, %c0_41] : memref<9x128x128xbf16, #tpu.memory_space<vmem>>, vector<1x128x128xbf16>
      %56 = vector.shape_cast %55 : vector<1x128x128xbf16> to vector<128x128xbf16>
      %cst_42 = arith.constant dense<0.000000e+00> : vector<16x128xf32>
      %57 = tpu.matmul %46, %56, %cst_42 {dimension_numbers = #tpu.dot_dimension_numbers<[1], [0], [0], [1], [0, 0, 1, 1], [], []>} : vector<16x128xbf16>, vector<128x128xbf16>, vector<16x128xf32> -> vector<16x128xf32>
      %58 = arith.addf %54, %57 : vector<16x128xf32>
      %59 = vector.extract_strided_slice %20 {offsets = [2, 0, 0], sizes = [1, 16, 128], strides = [1, 1, 1]} : vector<3x16x128xbf16> to vector<1x16x128xbf16>
      %60 = vector.shape_cast %59 : vector<1x16x128xbf16> to vector<16x128xbf16>
      %61 = vector.extract_strided_slice %60 {offsets = [0, 0], sizes = [15, 128], strides = [1, 1]} : vector<16x128xbf16> to vector<15x128xbf16>
      %62 = tpu.concatenate %21, %61 in 0 : vector<1x128xbf16>, vector<15x128xbf16> -> vector<16x128xbf16>
      %63 = vector.extract_strided_slice %60 {offsets = [1, 0], sizes = [15, 128], strides = [1, 1]} : vector<16x128xbf16> to vector<15x128xbf16>
      %64 = tpu.concatenate %63, %21 in 0 : vector<15x128xbf16>, vector<1x128xbf16> -> vector<16x128xbf16>
      %c6 = arith.constant 6 : index
      %c0_43 = arith.constant 0 : index
      %c0_44 = arith.constant 0 : index
      %65 = vector.load %arg4[%c6, %c0_43, %c0_44] : memref<9x128x128xbf16, #tpu.memory_space<vmem>>, vector<1x128x128xbf16>
      %66 = vector.shape_cast %65 : vector<1x128x128xbf16> to vector<128x128xbf16>
      %cst_45 = arith.constant dense<0.000000e+00> : vector<16x128xf32>
      %67 = tpu.matmul %62, %66, %cst_45 {dimension_numbers = #tpu.dot_dimension_numbers<[1], [0], [0], [1], [0, 0, 1, 1], [], []>} : vector<16x128xbf16>, vector<128x128xbf16>, vector<16x128xf32> -> vector<16x128xf32>
      %68 = arith.addf %58, %67 : vector<16x128xf32>
      %c7 = arith.constant 7 : index
      %c0_46 = arith.constant 0 : index
      %c0_47 = arith.constant 0 : index
      %69 = vector.load %arg4[%c7, %c0_46, %c0_47] : memref<9x128x128xbf16, #tpu.memory_space<vmem>>, vector<1x128x128xbf16>
      %70 = vector.shape_cast %69 : vector<1x128x128xbf16> to vector<128x128xbf16>
      %cst_48 = arith.constant dense<0.000000e+00> : vector<16x128xf32>
      %71 = tpu.matmul %60, %70, %cst_48 {dimension_numbers = #tpu.dot_dimension_numbers<[1], [0], [0], [1], [0, 0, 1, 1], [], []>} : vector<16x128xbf16>, vector<128x128xbf16>, vector<16x128xf32> -> vector<16x128xf32>
      %72 = arith.addf %68, %71 : vector<16x128xf32>
      %c8 = arith.constant 8 : index
      %c0_49 = arith.constant 0 : index
      %c0_50 = arith.constant 0 : index
      %73 = vector.load %arg4[%c8, %c0_49, %c0_50] : memref<9x128x128xbf16, #tpu.memory_space<vmem>>, vector<1x128x128xbf16>
      %74 = vector.shape_cast %73 : vector<1x128x128xbf16> to vector<128x128xbf16>
      %cst_51 = arith.constant dense<0.000000e+00> : vector<16x128xf32>
      %75 = tpu.matmul %64, %74, %cst_51 {dimension_numbers = #tpu.dot_dimension_numbers<[1], [0], [0], [1], [0, 0, 1, 1], [], []>} : vector<16x128xbf16>, vector<128x128xbf16>, vector<16x128xf32> -> vector<16x128xf32>
      %76 = arith.addf %72, %75 : vector<16x128xf32>
      %c0_52 = arith.constant 0 : index
      %77 = arith.index_cast %arg8 : i32 to index
      %c0_53 = arith.constant 0 : index
      %c0_54 = arith.constant 0 : index
      %78 = vector.load %arg5[%c0_52, %77, %c0_53, %c0_54] : memref<1x16x16x128xf32, #tpu.memory_space<vmem>>, vector<1x1x16x128xf32>
      %79 = vector.shape_cast %78 : vector<1x1x16x128xf32> to vector<16x128xf32>
      %80 = vector.shape_cast %76 : vector<16x128xf32> to vector<1x1x16x128xf32>
      tpu.vector_store %arg5[%c0_52, %77, %c0_53, %c0_54], %80 {strides = array<i32>} : memref<1x16x16x128xf32, #tpu.memory_space<vmem>>, vector<1x1x16x128xf32>,
      %cst_55 = arith.constant dense<0.000000e+00> : vector<128xf32>
      %81 = vector.multi_reduction <add>, %76, %cst_55 [0] : vector<16x128xf32> to vector<128xf32>
      %82 = vector.shape_cast %81 : vector<128xf32> to vector<1x128xf32>
      %83 = arith.addf %arg9, %82 : vector<1x128xf32>
      %84 = arith.mulf %76, %76 : vector<16x128xf32>
      %cst_56 = arith.constant dense<0.000000e+00> : vector<128xf32>
      %85 = vector.multi_reduction <add>, %84, %cst_56 [0] : vector<16x128xf32> to vector<128xf32>
      %86 = vector.shape_cast %85 : vector<128xf32> to vector<1x128xf32>
      %87 = arith.addf %arg10, %86 : vector<1x128xf32>
      scf.yield %83, %87 : vector<1x128xf32>, vector<1x128xf32>
    }
    %c16_i32_13 = arith.constant 16 : i32
    %c0_14 = arith.constant 0 : index
    %c0_15 = arith.constant 0 : index
    %c0_16 = arith.constant 0 : index
    %13 = vector.load %arg6[%c0_14, %c0_15, %c0_16] : memref<1x2x128xf32, #tpu.memory_space<vmem>>, vector<1x1x128xf32>
    %14 = vector.shape_cast %13 : vector<1x1x128xf32> to vector<1x128xf32>
    %15 = vector.shape_cast %12#0 : vector<1x128xf32> to vector<1x1x128xf32>
    tpu.vector_store %arg6[%c0_14, %c0_15, %c0_16], %15 {strides = array<i32>} : memref<1x2x128xf32, #tpu.memory_space<vmem>>, vector<1x1x128xf32>,
    %c0_17 = arith.constant 0 : index
    %c1 = arith.constant 1 : index
    %c0_18 = arith.constant 0 : index
    %16 = vector.load %arg6[%c0_17, %c1, %c0_18] : memref<1x2x128xf32, #tpu.memory_space<vmem>>, vector<1x1x128xf32>
    %17 = vector.shape_cast %16 : vector<1x1x128xf32> to vector<1x128xf32>
    %18 = vector.shape_cast %12#1 : vector<1x128xf32> to vector<1x1x128xf32>
    tpu.vector_store %arg6[%c0_17, %c1, %c0_18], %18 {strides = array<i32>} : memref<1x2x128xf32, #tpu.memory_space<vmem>>, vector<1x1x128xf32>,
    return
  }
  func.func @transform_0(%arg0: i32) -> (i32, i32, i32, i32) {
    %c0_i32 = arith.constant 0 : i32
    %c0_i32_0 = arith.constant 0 : i32
    %c0_i32_1 = arith.constant 0 : i32
    %c0_i32_2 = arith.constant 0 : i32
    return %arg0, %c0_i32, %c0_i32_0, %c0_i32_1 : i32, i32, i32, i32
  }
  func.func @transform_1(%arg0: i32) -> (i32, i32) {
    %c0_i32 = arith.constant 0 : i32
    %c0_i32_0 = arith.constant 0 : i32
    %c0_i32_1 = arith.constant 0 : i32
    return %c0_i32, %c0_i32_0 : i32, i32
  }
  func.func @transform_2(%arg0: i32) -> (i32, i32) {
    %c0_i32 = arith.constant 0 : i32
    %c0_i32_0 = arith.constant 0 : i32
    %c0_i32_1 = arith.constant 0 : i32
    return %c0_i32, %c0_i32_0 : i32, i32
  }
  func.func @transform_3(%arg0: i32) -> (i32, i32, i32) {
    %c0_i32 = arith.constant 0 : i32
    %c0_i32_0 = arith.constant 0 : i32
    %c0_i32_1 = arith.constant 0 : i32
    %c0_i32_2 = arith.constant 0 : i32
    return %c0_i32, %c0_i32_0, %c0_i32_1 : i32, i32, i32
  }
  func.func @transform_4(%arg0: i32) -> (i32, i32, i32, i32) {
    %c0_i32 = arith.constant 0 : i32
    %c0_i32_0 = arith.constant 0 : i32
    %c0_i32_1 = arith.constant 0 : i32
    %c0_i32_2 = arith.constant 0 : i32
    return %arg0, %c0_i32, %c0_i32_0, %c0_i32_1 : i32, i32, i32, i32
  }
  func.func @transform_5(%arg0: i32) -> (i32, i32, i32) {
    %c0_i32 = arith.constant 0 : i32
    %c0_i32_0 = arith.constant 0 : i32
    %c0_i32_1 = arith.constant 0 : i32
    return %arg0, %c0_i32, %c0_i32_0 : i32, i32, i32
  }
}

module attributes {stable_mosaic.version = 11 : i64} {
  func.func @_bn_add_relu_kernel(%arg0: i32, %arg1: memref<512x128xf32, #tpu.memory_space<vmem>>, %arg2: memref<512x128xf32, #tpu.memory_space<vmem>>, %arg3: memref<1x128xf32, #tpu.memory_space<vmem>>, %arg4: memref<1x128xf32, #tpu.memory_space<vmem>>, %arg5: memref<512x128xf32, #tpu.memory_space<vmem>>) attributes {dimension_semantics = [#tpu.dimension_semantics<parallel>], iteration_bounds = array<i64: 1>, scalar_prefetch = 0 : i64, scratch_operands = 0 : i64, tpu.core_type = #tpu.core_type<tc>, window_params = [{transform_indices = @transform_0, window_bounds = array<i64: 512, 128>}, {transform_indices = @transform_1, window_bounds = array<i64: 512, 128>}, {pipeline_mode = #tpu.pipeline_mode<synchronous>, transform_indices = @transform_2, window_bounds = array<i64: 1, 128>}, {pipeline_mode = #tpu.pipeline_mode<synchronous>, transform_indices = @transform_3, window_bounds = array<i64: 1, 128>}, {transform_indices = @transform_4, window_bounds = array<i64: 512, 128>}]} {
    %c0 = arith.constant 0 : index
    %c0_0 = arith.constant 0 : index
    %0 = vector.load %arg1[%c0, %c0_0] : memref<512x128xf32, #tpu.memory_space<vmem>>, vector<512x128xf32>
    %c0_1 = arith.constant 0 : index
    %c0_2 = arith.constant 0 : index
    %1 = vector.load %arg3[%c0_1, %c0_2] : memref<1x128xf32, #tpu.memory_space<vmem>>, vector<1x128xf32>
    %2 = vector.broadcast %1 : vector<1x128xf32> to vector<512x128xf32>
    %3 = arith.mulf %0, %2 : vector<512x128xf32>
    %c0_3 = arith.constant 0 : index
    %c0_4 = arith.constant 0 : index
    %4 = vector.load %arg4[%c0_3, %c0_4] : memref<1x128xf32, #tpu.memory_space<vmem>>, vector<1x128xf32>
    %5 = vector.broadcast %4 : vector<1x128xf32> to vector<512x128xf32>
    %6 = arith.addf %3, %5 : vector<512x128xf32>
    %c0_5 = arith.constant 0 : index
    %c0_6 = arith.constant 0 : index
    %7 = vector.load %arg2[%c0_5, %c0_6] : memref<512x128xf32, #tpu.memory_space<vmem>>, vector<512x128xf32>
    %8 = arith.addf %6, %7 : vector<512x128xf32>
    %cst = arith.constant 0.000000e+00 : f32
    %9 = vector.broadcast %cst : f32 to vector<512x128xf32>
    %10 = arith.maximumf %8, %9 : vector<512x128xf32>
    %c0_7 = arith.constant 0 : index
    %c0_8 = arith.constant 0 : index
    %11 = vector.load %arg5[%c0_7, %c0_8] : memref<512x128xf32, #tpu.memory_space<vmem>>, vector<512x128xf32>
    tpu.vector_store %arg5[%c0_7, %c0_8], %10 {strides = array<i32>} : memref<512x128xf32, #tpu.memory_space<vmem>>, vector<512x128xf32>,
    return
  }
  func.func @transform_0(%arg0: i32) -> (i32, i32) {
    %c0_i32 = arith.constant 0 : i32
    %c0_i32_0 = arith.constant 0 : i32
    return %arg0, %c0_i32 : i32, i32
  }
  func.func @transform_1(%arg0: i32) -> (i32, i32) {
    %c0_i32 = arith.constant 0 : i32
    %c0_i32_0 = arith.constant 0 : i32
    return %arg0, %c0_i32 : i32, i32
  }
  func.func @transform_2(%arg0: i32) -> (i32, i32) {
    %c0_i32 = arith.constant 0 : i32
    %c0_i32_0 = arith.constant 0 : i32
    %c0_i32_1 = arith.constant 0 : i32
    return %c0_i32, %c0_i32_0 : i32, i32
  }
  func.func @transform_3(%arg0: i32) -> (i32, i32) {
    %c0_i32 = arith.constant 0 : i32
    %c0_i32_0 = arith.constant 0 : i32
    %c0_i32_1 = arith.constant 0 : i32
    return %c0_i32, %c0_i32_0 : i32, i32
  }
  func.func @transform_4(%arg0: i32) -> (i32, i32) {
    %c0_i32 = arith.constant 0 : i32
    %c0_i32_0 = arith.constant 0 : i32
    return %arg0, %c0_i32 : i32, i32
  }
}

</mosaic_0001>

<bundles_post_ra>
// kernel: basic_block_forward.3
= control target key start
LH: loop header
LB: loop body
LE: loop exit
PB: predicated region body
PF: predicated region fallthrough
CT: control target
= control target key end

     0   :  { %s1038_s12 = smov 0   ;;  %s1192_s0 = inlined_call_operand.vmem [shape: bf16[2,18,16,4], index: 0, kind: input, shape index: {}]   ;;  %s1193_s1 = inlined_call_operand.vmem [shape: bf16[9,4,128], index: 1, kind: input, shape index: {}]   ;;  %s1194_s2 = inlined_call_operand.vmem [shape: f32[2,16,16,128], index: 2, kind: output, shape index: {0}]   ;;  %s1195_s3 = inlined_call_operand.vmem [shape: f32[2,2,128], index: 3, kind: output, shape index: {1}]  }
   0x1 LB: > { %s838_s13 = sadd.s32 4294967295, %s1002_s12   ;;  %p842_p0 = scmp.ge.s32.totalorder %s1002_s12, 1  ;;  %s1002_s12 = sphi %s1038_s12, %s14_s12  }
   0x2   : > { %p140_p1 = scmp.lt.s32.totalorder %s1002_s12, 3 }
   0x4   : > { %p141_p2 = pnand %p842_p0, %p140_p1 }
   0x5   : > { %p168_p3 = scmp.lt.s32.totalorder (!%p141_p2), %s838_s13, 1  ;;  %s1065_s26 = smov (!%p141_p2), 0  }
   0x6   : > { %144 = sbr.rel (%p141_p2) target bundleno = 270 (0x10e), region = 28 }
   0xb   : > { %s1203_s13 = smov (!%p168_p3, %s838_s13), 1  ;;  %v1061_v0 = vmov 0.0   ;;  %v1063_v1 = vmov 0.0  }
   0xc   : > { %s946_s14 = smul.u32 144, %s1203_s13  ;;  %s872_s15 = sshll.u32 %s1203_s13, 8 }
   0xd   : > { %s1049_s18 = scalar_lea.vmem %s1194_s2, %s872_s15  ;;  %s846_s19 = sshll.u32 %s1203_s13, 1 }
   0xe   : > { %s1054_s22 = scalar_lea.vmem %s1192_s0, %s946_s14  ;;  %s1059_s25 = scalar_lea.vmem %s1195_s3, %s846_s19 }
   0xf LB: >> { %v850_v2 = vld [vmem:[%s1193_s1 + $0x2] sm:$0x3]  ;;  %vm230_vm0 = vcmask 1041408   ;;  %v1016_v3 = vmov 0.0   ;;  %vm1017_vm1 = vmmov 0   ;;  %s873_s6 = sshll.u32 %s1014_s26, 3  ;;  %s1014_s26 = sphi %s1065_s26, %s188_s26   ;;  %v1010_v1 = vphi %v1063_v1, %v1201_v1   ;;  %v1006_v0 = vphi %v1061_v0, %v1200_v0  }
  0x10   : >> { %892 = vmatprep.subr.bf16.mxu0 %v1016_v3  ;;  %v232_v4 = vsel %vm230_vm0, %v850_v2, 0  ;;  %894 = vmatprep.mubr.msk.bf16.mxu0 %vm1017_vm1, %v1016_v3  ;;  %v853_v5 = vld [vmem:[%s1193_s1 + $0x4] sm:$0x3]  ;;  %v224_v6 = vld [vmem:[%s1193_s1] sm:$0x3]  ;;  %s1093_s7 = scalar_lea.vmem %s1054_s22, %s873_s6  ;;  %vm227_vm2 = vcmask 31744  }
  0x11   : >> { %893 = vmatpush3.bf16.msra.mxu0 %v232_v4  ;;  %898 = vmatprep.subr.bf16.mxu1 %v1016_v3  ;;  %v279_v7 = vsel %vm230_vm0, %v224_v6, 0  ;;  %vm213_vm3 = vcmask 1040384   ;;  %v981_v8 = vld [vmem:[%s1093_s7] sm:$0xff]   ;;  %v328_v9 = vsel %vm230_vm0, %v853_v5, 0  ;;  %vm214_vm4 = vsmask.f32 256 }
  0x12   : >> { %904 = vmatprep.subr.bf16.mxu0 %v1016_v3  ;;  %899 = vmatpush3.bf16.msra.mxu1 %v279_v7  ;;  %v206_v10 = vshrl.u32 %v981_v8, 16  ;;  %v209_v11 = vshll.u32 %v981_v8, 16  ;;  %vm220_vm5 = vcmask 1047552   ;;  %vm221_vm6 = vsmask.f32 7424  ;;  %v982_v12 = vld [vmem:[%s1093_s7 + $0x8] sm:$0xff]   ;;  %vm1109_vm7 = vmand %vm213_vm3, %vm214_vm4 }
  0x13   : >> { %900 = vmatprep.mubr.msk.bf16.mxu1 %vm1017_vm1, %v1016_v3  ;;  %910 = vmatprep.subr.bf16.mxu1 %v1016_v3  ;;  %v856_v13 = vld [vmem:[%s1193_s1 + $0x6] sm:$0x3]  ;;  %v379_v17 = vshrl.u32 %v982_v12, 16  ;;  %vm1114_vm8 = vmand %vm220_vm5, %vm221_vm6  ;;  %v858_v19 = vld [vmem:[%s1193_s1 + $0x8] sm:$0x3]  ;;  %v382_v23 = vshll.u32 %v982_v12, 16 }
  0x14   : >> { %895 = vmatmul.mubr.msk.bf16.vlgmr.msra.gmra.mxu0 %vm227_vm2, %v981_v8  ;;  %v208_v14 = vrot.slane %v206_v10, 7  ;;  %v217_v16 = vrot.slane %v209_v11, 1  ;;  %v397_v24 = vsel %vm230_vm0, %v856_v13, 0  ;;  %v983_v25 = vld [vmem:[%s1093_s7 + $0x10] sm:$0xff]   ;;  %v447_v28 = vsel %vm230_vm0, %v858_v19, 0  ;;  %s869_s23 = sshll.u32 %s1014_s26, 4 }
  0x15   : >> { %905 = vmatpush3.bf16.msra.mxu0 %v328_v9  ;;  %906 = vmatprep.mubr.msk.bf16.mxu0 %vm1017_vm1, %v1016_v3  ;;  %v381_v22 = vrot.slane %v379_v17, 7  ;;  %v549_v30 = vshrl.u32 %v983_v25, 16  ;;  %v860_v31 = vld [vmem:[%s1193_s1 + $0xa] sm:$0x3]  ;;  %v863_v32 = vld [vmem:[%s1193_s1 + $0xc] sm:$0x3]  ;;  %s714_s24 = scalar_lea.vmem %s1049_s18, %s869_s23 }
  0x16   : >> { %916 = vmatprep.subr.bf16.mxu0 %v1016_v3  ;;  %v211_v20 = vor.u32 %v209_v11, %v208_v14  ;;  %v218_v21 = vor.u32 %v217_v16, %v206_v10  ;;  %v387_v34 = vrot.slane %v382_v23, 1  ;;  %v498_v35 = vsel %vm230_vm0, %v860_v31, 0  ;;  %v865_v41 = vld [vmem:[%s1193_s1 + $0xe] sm:$0x3]  ;;  %v867_v42 = vld [vmem:[%s1193_s1 + $0x10] sm:$0x3] }
  0x17   : >> { %v384_v29 = vor.u32 %v382_v23, %v381_v22  ;;  %v551_v36 = vrot.slane %v549_v30, 7  ;;  %v552_v37 = vshll.u32 %v983_v25, 16  ;;  %v567_v38 = vsel %vm230_vm0, %v863_v32, 0  ;;  %s188_s26 = sadd.s32 1, %s1014_s26  }
  0x18   : >> { %v216_v26 = vsel %vm1109_vm7, 0, %v211_v20  ;;  %v223_v27 = vsel %vm1114_vm8, %v218_v21, 0  ;;  %v388_v39 = vor.u32 %v387_v34, %v379_v17  ;;  %v617_v44 = vsel %vm230_vm0, %v865_v41, 0  ;;  %p185_p4 = scmp.ge.s32.totalorder %s188_s26, 16  }
  0x19   : >> { %901 = vmatmul.mubr.msk.bf16.vlgmr.msra.gmra.mxu1 %vm227_vm2, %v216_v26  ;;  %v386_v33 = vsel %vm1109_vm7, 0, %v384_v29  ;;  %v554_v40 = vor.u32 %v552_v37, %v551_v36  ;;  %v557_v46 = vrot.slane %v552_v37, 1  ;;  %v668_v47 = vsel %vm230_vm0, %v867_v42, 0 }
  0x1a   : >> { %911 = vmatpush3.bf16.msra.mxu1 %v397_v24  ;;  %912 = vmatprep.mubr.msk.bf16.mxu1 %vm1017_vm1, %v1016_v3  ;;  %v390_v43 = vsel %vm1114_vm8, %v388_v39, 0 }
  0x1b   : >> { %922 = vmatprep.subr.bf16.mxu1 %v1016_v3  ;;  %v556_v45 = vsel %vm1109_vm7, 0, %v554_v40  ;;  %v558_v48 = vor.u32 %v557_v46, %v549_v30 }
  0x1c   : >> { %907 = vmatmul.mubr.msk.bf16.vlgmr.msra.gmra.mxu0 %vm227_vm2, %v223_v27 }
  0x1d   : >> { %917 = vmatpush3.bf16.msra.mxu0 %v447_v28  ;;  %918 = vmatprep.mubr.msk.bf16.mxu0 %vm1017_vm1, %v1016_v3  ;;  %v560_v49 = vsel %vm1114_vm8, %v558_v48, 0 }
  0x1e   : >> { %928 = vmatprep.subr.bf16.mxu0 %v1016_v3 }
  0x21   : >> { %913 = vmatmul.mubr.msk.bf16.vlgmr.msra.gmra.mxu1 %vm227_vm2, %v386_v33 }
  0x22   : >> { %923 = vmatpush3.bf16.msra.mxu1 %v498_v35  ;;  %924 = vmatprep.mubr.msk.bf16.mxu1 %vm1017_vm1, %v1016_v3 }
  0x23   : >> { %934 = vmatprep.subr.bf16.mxu1 %v1016_v3 }
  0x24   : >> { %919 = vmatmul.mubr.msk.bf16.vlgmr.msra.gmra.mxu0 %vm227_vm2, %v982_v12 }
  0x25   : >> { %929 = vmatpush3.bf16.msra.mxu0 %v567_v38  ;;  %930 = vmatprep.mubr.msk.bf16.mxu0 %vm1017_vm1, %v1016_v3 }
  0x26   : >> { %940 = vmatprep.subr.bf16.mxu0 %v1016_v3 }
  0x29   : >> { %925 = vmatmul.mubr.msk.bf16.vlgmr.msra.gmra.mxu1 %vm227_vm2, %v390_v43 }
  0x2a   : >> { %935 = vmatpush3.bf16.msra.mxu1 %v617_v44  ;;  %936 = vmatprep.mubr.msk.bf16.mxu1 %vm1017_vm1, %v1016_v3 }
  0x2c   : >> { %931 = vmatmul.mubr.msk.bf16.vlgmr.msra.gmra.mxu0 %vm227_vm2, %v556_v45 }
  0x2d   : >> { %941 = vmatpush3.bf16.msra.mxu0 %v668_v47  ;;  %942 = vmatprep.mubr.msk.bf16.mxu0 %vm1017_vm1, %v1016_v3 }
  0x31   : >> { %937 = vmatmul.mubr.msk.bf16.vlgmr.msra.gmra.mxu1 %vm227_vm2, %v983_v25 }
  0x34   : >> { %943 = vmatmul.mubr.msk.bf16.vlgmr.msra.gmra.mxu0 %vm227_vm2, %v560_v49 }
  0xd4   : >> { %v268_v50 = vpop.f32.mrf.mxu0 }
  0xd6   : >> { %v896_v51 = vpop.f32.mrf.mxu0 }
  0xd8   : >> { %v271_v52 = vpop.f32.mrf.mxu0 }
  0xd9   : >> { %v315_v54 = vpop.f32.mrf.mxu1 }
  0xda   : >> { %v897_v53 = vpop.f32.mrf.mxu0  ;;  %v316_v61 = vadd.f32 %v315_v54, %v268_v50 }
  0xdb   : >> { %v902_v56 = vpop.f32.mrf.mxu1 }
  0xdc   : >> { %v364_v55 = vpop.f32.mrf.mxu0 }
  0xdd   : >> { %v318_v58 = vpop.f32.mrf.mxu1  ;;  %v371_v4 = vadd.f32 %v364_v55, %v316_v61 }
  0xde   : >> { %v908_v57 = vpop.f32.mrf.mxu0  ;;  %v319_v5 = vadd.f32 %v318_v58, %v271_v52 }
  0xdf   : >> { %v903_v60 = vpop.f32.mrf.mxu1 }
  0xe0   : >> { %v367_v59 = vpop.f32.mrf.mxu0 }
  0xe1   : >> { %v433_v63 = vpop.f32.mrf.mxu1  ;;  %v372_v11 = vadd.f32 %v367_v59, %v319_v5 }
  0xe2   : >> { %v909_v62 = vpop.f32.mrf.mxu0  ;;  %v440_v8 = vadd.f32 %v433_v63, %v371_v4 }
  0xe3   : >> { %v914_v3 = vpop.f32.mrf.mxu1 }
  0xe4   : >> { %v483_v2 = vpop.f32.mrf.mxu0 }
  0xe5   : >> { %v436_v7 = vpop.f32.mrf.mxu1  ;;  %v490_v14 = vadd.f32 %v483_v2, %v440_v8 }
  0xe6   : >> { %v920_v6 = vpop.f32.mrf.mxu0  ;;  %v441_v15 = vadd.f32 %v436_v7, %v372_v11 }
  0xe7   : >> { %v915_v10 = vpop.f32.mrf.mxu1 }
  0xe8   : >> { %v486_v9 = vpop.f32.mrf.mxu0 }
  0xe9   : >> { %v534_v13 = vpop.f32.mrf.mxu1  ;;  %v491_v21 = vadd.f32 %v486_v9, %v441_v15 }
  0xea   : >> { %v921_v12 = vpop.f32.mrf.mxu0  ;;  %v541_v18 = vadd.f32 %v534_v13, %v490_v14 }
  0xeb   : >> { %v926_v17 = vpop.f32.mrf.mxu1 }
  0xec   : >> { %v603_v16 = vpop.f32.mrf.mxu0 }
  0xed   : >> { %v537_v20 = vpop.f32.mrf.mxu1  ;;  %v610_v24 = vadd.f32 %v603_v16, %v541_v18 }
  0xee   : >> { %v932_v19 = vpop.f32.mrf.mxu0  ;;  %v542_v25 = vadd.f32 %v537_v20, %v491_v21 }
  0xef   : >> { %v927_v23 = vpop.f32.mrf.mxu1 }
  0xf0   : >> { %v606_v22 = vpop.f32.mrf.mxu0 }
  0xf1   : >> { %v653_v27 = vpop.f32.mrf.mxu1  ;;  %v611_v31 = vadd.f32 %v606_v22, %v542_v25 }
  0xf2   : >> { %v933_v26 = vpop.f32.mrf.mxu0  ;;  %v660_v28 = vadd.f32 %v653_v27, %v610_v24 }
  0xf3   : >> { %v938_v30 = vpop.f32.mrf.mxu1 }
  0xf4   : >> { %v704_v29 = vpop.f32.mrf.mxu0 }
  0xf5   : >> { %v711_v32 = vadd.f32 %v704_v29, %v660_v28  ;;  %v656_v34 = vpop.f32.mrf.mxu1 }
  0xf6   : >> { %v944_v33 = vpop.f32.mrf.mxu0  ;;  %v661_v35 = vadd.f32 %v656_v34, %v611_v31 }
  0xf7   : >> { %715 = vst [vmem:[%s714_s24] sm:$0xff] %v711_v32  ;;  %v939_v37 = vpop.f32.mrf.mxu1  ;;  %v725_v40 = vmul.f32 %v711_v32, %v711_v32 }
  0xf8   : >> { %v707_v36 = vpop.f32.mrf.mxu0 }
  0xf9   : >> { %v712_v38 = vadd.f32 %v707_v36, %v661_v35 }
  0xfa   : >> { %v945_v39 = vpop.f32.mrf.mxu0 }
  0xfb   : >> { %716 = vst [vmem:[%s714_s24 + $0x8] sm:$0xff] %v712_v38  ;;  %v717_v41 = vadd.f32 %v712_v38, %v711_v32  ;;  %v726_v42 = vmul.f32 %v712_v38, %v712_v38 }
  0xfd   : >> { %v718_v43 = vrot.slane %v717_v41, 4  ;;  %v727_v44 = vadd.f32 %v726_v42, %v725_v40 }
  0xff   : >> { %v719_v45 = vadd.f32 %v718_v43, %v717_v41  ;;  %v728_v46 = vrot.slane %v727_v44, 4 }
 0x101   : >> { %v720_v47 = vrot.slane %v719_v45, 2  ;;  %v729_v48 = vadd.f32 %v728_v46, %v727_v44 }
 0x103   : >> { %v721_v49 = vadd.f32 %v720_v47, %v719_v45  ;;  %v730_v50 = vrot.slane %v729_v48, 2 }
 0x105   : >> { %v722_v51 = vrot.slane %v721_v49, 1  ;;  %v731_v52 = vadd.f32 %v730_v50, %v729_v48 }
 0x107   : >> { %v723_v53 = vadd.f32 %v722_v51, %v721_v49  ;;  %v732_v54 = vrot.slane %v731_v52, 1 }
 0x109   : >> { %v724_v55 = vadd.f32 %v1010_v1, %v723_v53   ;;  %v733_v56 = vadd.f32 %v732_v54, %v731_v52  ;;  %187 = sbr.rel (!%p185_p4) target bundleno = 15 (0xf), region = 87 }
 0x10b   : >> { %v734_v57 = vadd.f32 %v1006_v0, %v733_v56   ;;  %v1201_v1 = vmov %v724_v55  ;;  %735 = vst [vmem:[%s1059_s25] sm:$0x1] (%p185_p4), %v724_v55 }
 0x10d   : >> { %v1200_v0 = vmov %v734_v57  ;;  %736 = vst [vmem:[%s1059_s25 + $0x1] sm:$0x1] (%p185_p4), %v734_v57 }
 0x10e PF: > { %s14_s12 = sadd.s32 1, %s1002_s12  }
 0x10f   : > { %p11_p5 = scmp.ge.s32.totalorder %s14_s12, 4  }
 0x111   :  { %13 = sbr.rel (!%p11_p5) target bundleno = 1 (0x1), region = 98 }

// kernel: basic_block_forward.5
= control target key start
LH: loop header
LB: loop body
LE: loop exit
PB: predicated region body
PF: predicated region fallthrough
CT: control target
= control target key end

     0   :  { %s1224_s0 = inlined_call_operand.vmem [shape: f32[512,128], index: 0, kind: input, shape index: {}]   ;;  %s1225_s1 = inlined_call_operand.vmem [shape: f32[512,128], index: 1, kind: input, shape index: {}]   ;;  %s1226_s2 = inlined_call_operand.vmem [shape: f32[1,128], index: 2, kind: input, shape index: {}]   ;;  %s1227_s3 = inlined_call_operand.vmem [shape: f32[1,128], index: 3, kind: input, shape index: {}]   ;;  %s1228_s4 = inlined_call_operand.vmem [shape: f32[512,128], index: 4, kind: output, shape index: {}]  }
   0x1   :  { %v17_v0 = vld [vmem:[%s1224_s0] sm:$0xff]  ;;  %v18_v4 = vld [vmem:[%s1224_s0 + $0x8] sm:$0xff]  ;;  %v19_v7 = vld [vmem:[%s1224_s0 + $0x10] sm:$0xff] }
   0x2   :  { %v516_v1 = vld [vmem:[%s1226_s2] ss:$0 sm:$0xff]  ;;  %v20_v8 = vld [vmem:[%s1224_s0 + $0x18] sm:$0xff]  ;;  %v224_v10 = vld [vmem:[%s1225_s1 + $0x8] sm:$0xff] }
   0x3   :  { %v521_v2 = vld [vmem:[%s1227_s3] ss:$0 sm:$0xff]  ;;  %v88_v3 = vmul.f32 %v516_v1, %v17_v0  ;;  %v89_v6 = vmul.f32 %v516_v1, %v18_v4  ;;  %v90_v11 = vmul.f32 %v516_v1, %v19_v7  ;;  %v225_v12 = vld [vmem:[%s1225_s1 + $0x10] sm:$0xff]  ;;  %v91_v13 = vmul.f32 %v516_v1, %v20_v8  ;;  %v226_v16 = vld [vmem:[%s1225_s1 + $0x18] sm:$0xff] }
   0x4   :  { %v223_v5 = vld [vmem:[%s1225_s1] sm:$0xff]  ;;  %v22_v18 = vld [vmem:[%s1224_s0 + $0x28] sm:$0xff]  ;;  %v23_v19 = vld [vmem:[%s1224_s0 + $0x30] sm:$0xff] }
   0x5   :  { %v159_v9 = vadd.f32 %v521_v2, %v88_v3  ;;  %v21_v14 = vld [vmem:[%s1224_s0 + $0x20] sm:$0xff]  ;;  %v160_v15 = vadd.f32 %v521_v2, %v89_v6  ;;  %v161_v21 = vadd.f32 %v521_v2, %v90_v11  ;;  %v162_v22 = vadd.f32 %v521_v2, %v91_v13  ;;  %v24_v25 = vld [vmem:[%s1224_s0 + $0x38] sm:$0xff]  ;;  %v228_v28 = vld [vmem:[%s1225_s1 + $0x28] sm:$0xff] }
   0x6   :  { %v92_v17 = vmul.f32 %v516_v1, %v21_v14  ;;  %v227_v23 = vld [vmem:[%s1225_s1 + $0x20] sm:$0xff]  ;;  %v93_v24 = vmul.f32 %v516_v1, %v22_v18  ;;  %v94_v29 = vmul.f32 %v516_v1, %v23_v19  ;;  %v95_v30 = vmul.f32 %v516_v1, %v24_v25  ;;  %v229_v36 = vld [vmem:[%s1225_s1 + $0x30] sm:$0xff]  ;;  %v230_v37 = vld [vmem:[%s1225_s1 + $0x38] sm:$0xff] }
   0x7   :  { %v287_v20 = vadd.f32 %v223_v5, %v159_v9  ;;  %v288_v26 = vadd.f32 %v224_v10, %v160_v15  ;;  %v25_v31 = vld [vmem:[%s1224_s0 + $0x40] sm:$0xff]  ;;  %v289_v33 = vadd.f32 %v225_v12, %v161_v21  ;;  %v290_v34 = vadd.f32 %v226_v16, %v162_v22  ;;  %v26_v38 = vld [vmem:[%s1224_s0 + $0x48] sm:$0xff]  ;;  %v27_v43 = vld [vmem:[%s1224_s0 + $0x50] sm:$0xff] }
   0x8   :  { %v163_v27 = vadd.f32 %v521_v2, %v92_v17  ;;  %v164_v35 = vadd.f32 %v521_v2, %v93_v24  ;;  %v165_v41 = vadd.f32 %v521_v2, %v94_v29  ;;  %v166_v42 = vadd.f32 %v521_v2, %v95_v30  ;;  %v28_v44 = vld [vmem:[%s1224_s0 + $0x58] sm:$0xff]  ;;  %v29_v49 = vld [vmem:[%s1224_s0 + $0x60] sm:$0xff]  ;;  %v30_v55 = vld [vmem:[%s1224_s0 + $0x68] sm:$0xff] }
   0x9   :  { %v351_v32 = vmax.f32 %v287_v20, 0.0  ;;  %v352_v39 = vmax.f32 %v288_v26, 0.0  ;;  %v353_v45 = vmax.f32 %v289_v33, 0.0  ;;  %v354_v46 = vmax.f32 %v290_v34, 0.0  ;;  %v231_v53 = vld [vmem:[%s1225_s1 + $0x40] sm:$0xff]  ;;  %v232_v58 = vld [vmem:[%s1225_s1 + $0x48] sm:$0xff] }
   0xa   :  { %v291_v40 = vadd.f32 %v227_v23, %v163_v27  ;;  %v292_v47 = vadd.f32 %v228_v28, %v164_v35  ;;  %v96_v48 = vmul.f32 %v516_v1, %v25_v31  ;;  %v293_v51 = vadd.f32 %v229_v36, %v165_v41  ;;  %v31_v61 = vld [vmem:[%s1224_s0 + $0x70] sm:$0xff]  ;;  %v32_v62 = vld [vmem:[%s1224_s0 + $0x78] sm:$0xff]  ;;  %v235_v10 = vld [vmem:[%s1225_s1 + $0x60] sm:$0xff] }
   0xb   :  { %415 = vst [vmem:[%s1228_s4] sm:$0xff] %v351_v32  ;;  %416 = vst [vmem:[%s1228_s4 + $0x8] sm:$0xff] %v352_v39  ;;  %v294_v52 = vadd.f32 %v230_v37, %v166_v42  ;;  %v97_v54 = vmul.f32 %v516_v1, %v26_v38  ;;  %v98_v59 = vmul.f32 %v516_v1, %v27_v43  ;;  %v233_v4 = vld [vmem:[%s1225_s1 + $0x50] sm:$0xff]  ;;  %v234_v5 = vld [vmem:[%s1225_s1 + $0x58] sm:$0xff] }
   0xc   :  { %v355_v50 = vmax.f32 %v291_v40, 0.0  ;;  %417 = vst [vmem:[%s1228_s4 + $0x10] sm:$0xff] %v353_v45  ;;  %418 = vst [vmem:[%s1228_s4 + $0x18] sm:$0xff] %v354_v46  ;;  %v356_v56 = vmax.f32 %v292_v47, 0.0  ;;  %v167_v57 = vadd.f32 %v521_v2, %v96_v48  ;;  %v99_v60 = vmul.f32 %v516_v1, %v28_v44  ;;  %v236_v14 = vld [vmem:[%s1225_s1 + $0x68] sm:$0xff]  ;;  %v33_v17 = vld [vmem:[%s1224_s0 + $0x80] sm:$0xff] }
   0xd   :  { %v357_v63 = vmax.f32 %v293_v51, 0.0  ;;  %v358_v0 = vmax.f32 %v294_v52, 0.0  ;;  %v168_v3 = vadd.f32 %v521_v2, %v97_v54  ;;  %v100_v6 = vmul.f32 %v516_v1, %v29_v49  ;;  %v237_v22 = vld [vmem:[%s1225_s1 + $0x70] sm:$0xff]  ;;  %v238_v23 = vld [vmem:[%s1225_s1 + $0x78] sm:$0xff]  ;;  %v34_v24 = vld [vmem:[%s1224_s0 + $0x88] sm:$0xff] }
   0xe   :  { %419 = vst [vmem:[%s1228_s4 + $0x20] sm:$0xff] %v355_v50  ;;  %420 = vst [vmem:[%s1228_s4 + $0x28] sm:$0xff] %v356_v56  ;;  %v295_v7 = vadd.f32 %v231_v53, %v167_v57  ;;  %v169_v8 = vadd.f32 %v521_v2, %v98_v59  ;;  %v170_v9 = vadd.f32 %v521_v2, %v99_v60  ;;  %v35_v29 = vld [vmem:[%s1224_s0 + $0x90] sm:$0xff]  ;;  %v36_v30 = vld [vmem:[%s1224_s0 + $0x98] sm:$0xff] }
   0xf   :  { %v101_v11 = vmul.f32 %v516_v1, %v30_v55  ;;  %421 = vst [vmem:[%s1228_s4 + $0x30] sm:$0xff] %v357_v63  ;;  %422 = vst [vmem:[%s1228_s4 + $0x38] sm:$0xff] %v358_v0  ;;  %v296_v12 = vadd.f32 %v232_v58, %v168_v3  ;;  %v171_v13 = vadd.f32 %v521_v2, %v100_v6  ;;  %v37_v35 = vld [vmem:[%s1224_s0 + $0xa0] sm:$0xff]  ;;  %v38_v41 = vld [vmem:[%s1224_s0 + $0xa8] sm:$0xff] }
  0x10   :  { %v102_v15 = vmul.f32 %v516_v1, %v31_v61  ;;  %v103_v16 = vmul.f32 %v516_v1, %v32_v62  ;;  %v359_v18 = vmax.f32 %v295_v7, 0.0  ;;  %v297_v19 = vadd.f32 %v233_v4, %v169_v8  ;;  %v239_v39 = vld [vmem:[%s1225_s1 + $0x80] sm:$0xff]  ;;  %v240_v44 = vld [vmem:[%s1225_s1 + $0x88] sm:$0xff]  ;;  %v39_v47 = vld [vmem:[%s1224_s0 + $0xb0] sm:$0xff] }
  0x11   :  { %v298_v20 = vadd.f32 %v234_v5, %v170_v9  ;;  %v172_v21 = vadd.f32 %v521_v2, %v101_v11  ;;  %v360_v25 = vmax.f32 %v296_v12, 0.0  ;;  %v299_v26 = vadd.f32 %v235_v10, %v171_v13  ;;  %v40_v48 = vld [vmem:[%s1224_s0 + $0xb8] sm:$0xff]  ;;  %v241_v52 = vld [vmem:[%s1225_s1 + $0x90] sm:$0xff]  ;;  %v243_v58 = vld [vmem:[%s1225_s1 + $0xa0] sm:$0xff] }
  0x12   :  { %v173_v27 = vadd.f32 %v521_v2, %v102_v15  ;;  %v174_v28 = vadd.f32 %v521_v2, %v103_v16  ;;  %423 = vst [vmem:[%s1228_s4 + $0x40] sm:$0xff] %v359_v18  ;;  %v361_v31 = vmax.f32 %v297_v19, 0.0  ;;  %v104_v34 = vmul.f32 %v516_v1, %v33_v17  ;;  %v242_v53 = vld [vmem:[%s1225_s1 + $0x98] sm:$0xff]  ;;  %v244_v62 = vld [vmem:[%s1225_s1 + $0xa8] sm:$0xff]  ;;  %v41_v3 = vld [vmem:[%s1224_s0 + $0xc0] sm:$0xff] }
  0x13   :  { %v362_v32 = vmax.f32 %v298_v20, 0.0  ;;  %v300_v33 = vadd.f32 %v236_v14, %v172_v21  ;;  %424 = vst [vmem:[%s1228_s4 + $0x48] sm:$0xff] %v360_v25  ;;  %v363_v36 = vmax.f32 %v299_v26, 0.0  ;;  %v105_v40 = vmul.f32 %v516_v1, %v34_v24  ;;  %v245_v8 = vld [vmem:[%s1225_s1 + $0xb0] sm:$0xff]  ;;  %v246_v9 = vld [vmem:[%s1225_s1 + $0xb8] sm:$0xff]  ;;  %v42_v10 = vld [vmem:[%s1224_s0 + $0xc8] sm:$0xff] }
  0x14   :  { %v301_v37 = vadd.f32 %v237_v22, %v173_v27  ;;  %v302_v38 = vadd.f32 %v238_v23, %v174_v28  ;;  %425 = vst [vmem:[%s1228_s4 + $0x50] sm:$0xff] %v361_v31  ;;  %v175_v43 = vadd.f32 %v521_v2, %v104_v34  ;;  %v106_v45 = vmul.f32 %v516_v1, %v35_v29  ;;  %v43_v15 = vld [vmem:[%s1224_s0 + $0xd0] sm:$0xff]  ;;  %v44_v16 = vld [vmem:[%s1224_s0 + $0xd8] sm:$0xff]  ;;  %v45_v21 = vld [vmem:[%s1224_s0 + $0xe0] sm:$0xff] }
  0x15   :  { %426 = vst [vmem:[%s1228_s4 + $0x58] sm:$0xff] %v362_v32  ;;  %v364_v42 = vmax.f32 %v300_v33, 0.0  ;;  %v107_v46 = vmul.f32 %v516_v1, %v36_v30  ;;  %427 = vst [vmem:[%s1228_s4 + $0x60] sm:$0xff] %v363_v36  ;;  %v176_v51 = vadd.f32 %v521_v2, %v105_v40  ;;  %v108_v54 = vmul.f32 %v516_v1, %v37_v35  ;;  %v247_v25 = vld [vmem:[%s1225_s1 + $0xc0] sm:$0xff]  ;;  %v46_v27 = vld [vmem:[%s1224_s0 + $0xe8] sm:$0xff] }
  0x16   :  { %v365_v49 = vmax.f32 %v301_v37, 0.0  ;;  %v366_v50 = vmax.f32 %v302_v38, 0.0  ;;  %v303_v55 = vadd.f32 %v239_v39, %v175_v43  ;;  %v177_v56 = vadd.f32 %v521_v2, %v106_v45  ;;  %v248_v30 = vld [vmem:[%s1225_s1 + $0xc8] sm:$0xff]  ;;  %v47_v33 = vld [vmem:[%s1224_s0 + $0xf0] sm:$0xff]  ;;  %v48_v34 = vld [vmem:[%s1224_s0 + $0xf8] sm:$0xff] }
  0x17   :  { %428 = vst [vmem:[%s1228_s4 + $0x68] sm:$0xff] %v364_v42  ;;  %v178_v57 = vadd.f32 %v521_v2, %v107_v46  ;;  %v109_v59 = vmul.f32 %v516_v1, %v38_v41  ;;  %v304_v60 = vadd.f32 %v240_v44, %v176_v51  ;;  %v179_v61 = vadd.f32 %v521_v2, %v108_v54  ;;  %v249_v38 = vld [vmem:[%s1225_s1 + $0xd0] sm:$0xff]  ;;  %v250_v39 = vld [vmem:[%s1225_s1 + $0xd8] sm:$0xff]  ;;  %v251_v44 = vld [vmem:[%s1225_s1 + $0xe0] sm:$0xff] }
  0x18   :  { %429 = vst [vmem:[%s1228_s4 + $0x70] sm:$0xff] %v365_v49  ;;  %430 = vst [vmem:[%s1228_s4 + $0x78] sm:$0xff] %v366_v50  ;;  %v110_v63 = vmul.f32 %v516_v1, %v39_v47  ;;  %v111_v0 = vmul.f32 %v516_v1, %v40_v48  ;;  %v367_v4 = vmax.f32 %v303_v55, 0.0  ;;  %v305_v5 = vadd.f32 %v241_v52, %v177_v56  ;;  %v252_v48 = vld [vmem:[%s1225_s1 + $0xe8] sm:$0xff]  ;;  %v49_v51 = vld [vmem:[%s1224_s0 + $0x100] sm:$0xff] }
  0x19   :  { %v306_v6 = vadd.f32 %v242_v53, %v178_v57  ;;  %v180_v7 = vadd.f32 %v521_v2, %v109_v59  ;;  %v368_v11 = vmax.f32 %v304_v60, 0.0  ;;  %v307_v12 = vadd.f32 %v243_v58, %v179_v61  ;;  %v253_v56 = vld [vmem:[%s1225_s1 + $0xf0] sm:$0xff]  ;;  %v254_v57 = vld [vmem:[%s1225_s1 + $0xf8] sm:$0xff]  ;;  %v50_v58 = vld [vmem:[%s1224_s0 + $0x108] sm:$0xff] }
  0x1a   :  { %v181_v13 = vadd.f32 %v521_v2, %v110_v63  ;;  %v182_v14 = vadd.f32 %v521_v2, %v111_v0  ;;  %431 = vst [vmem:[%s1228_s4 + $0x80] sm:$0xff] %v367_v4  ;;  %v369_v17 = vmax.f32 %v305_v5, 0.0  ;;  %v112_v20 = vmul.f32 %v516_v1, %v41_v3  ;;  %v51_v63 = vld [vmem:[%s1224_s0 + $0x110] sm:$0xff]  ;;  %v52_v0 = vld [vmem:[%s1224_s0 + $0x118] sm:$0xff] }
  0x1b   :  { %v370_v18 = vmax.f32 %v306_v6, 0.0  ;;  %v308_v19 = vadd.f32 %v244_v62, %v180_v7  ;;  %432 = vst [vmem:[%s1228_s4 + $0x88] sm:$0xff] %v368_v11  ;;  %v371_v22 = vmax.f32 %v307_v12, 0.0  ;;  %v113_v26 = vmul.f32 %v516_v1, %v42_v10  ;;  %v53_v7 = vld [vmem:[%s1224_s0 + $0x120] sm:$0xff] }
  0x1c   :  { %v309_v23 = vadd.f32 %v245_v8, %v181_v13  ;;  %v310_v24 = vadd.f32 %v246_v9, %v182_v14  ;;  %433 = vst [vmem:[%s1228_s4 + $0x90] sm:$0xff] %v369_v17  ;;  %v183_v29 = vadd.f32 %v521_v2, %v112_v20  ;;  %v114_v31 = vmul.f32 %v516_v1, %v43_v15  ;;  %v255_v11 = vld [vmem:[%s1225_s1 + $0x100] sm:$0xff]  ;;  %v54_v13 = vld [vmem:[%s1224_s0 + $0x128] sm:$0xff]  ;;  %v56_v20 = vld [vmem:[%s1224_s0 + $0x138] sm:$0xff] }
  0x1d   :  { %434 = vst [vmem:[%s1228_s4 + $0x98] sm:$0xff] %v370_v18  ;;  %v372_v28 = vmax.f32 %v308_v19, 0.0  ;;  %v115_v32 = vmul.f32 %v516_v1, %v44_v16  ;;  %435 = vst [vmem:[%s1228_s4 + $0xa0] sm:$0xff] %v371_v22  ;;  %v184_v37 = vadd.f32 %v521_v2, %v113_v26  ;;  %v116_v40 = vmul.f32 %v516_v1, %v45_v21  ;;  %v256_v16 = vld [vmem:[%s1225_s1 + $0x108] sm:$0xff]  ;;  %v55_v19 = vld [vmem:[%s1224_s0 + $0x130] sm:$0xff] }
  0x1e   :  { %v373_v35 = vmax.f32 %v309_v23, 0.0  ;;  %v374_v36 = vmax.f32 %v310_v24, 0.0  ;;  %v311_v41 = vadd.f32 %v247_v25, %v183_v29  ;;  %v185_v42 = vadd.f32 %v521_v2, %v114_v31  ;;  %v257_v24 = vld [vmem:[%s1225_s1 + $0x110] sm:$0xff]  ;;  %v258_v25 = vld [vmem:[%s1225_s1 + $0x118] sm:$0xff] }
  0x1f   :  { %436 = vst [vmem:[%s1228_s4 + $0xa8] sm:$0xff] %v372_v28  ;;  %v186_v43 = vadd.f32 %v521_v2, %v115_v32  ;;  %v117_v45 = vmul.f32 %v516_v1, %v46_v27  ;;  %v312_v46 = vadd.f32 %v248_v30, %v184_v37  ;;  %v187_v47 = vadd.f32 %v521_v2, %v116_v40  ;;  %v259_v30 = vld [vmem:[%s1225_s1 + $0x120] sm:$0xff] }
  0x20   :  { %437 = vst [vmem:[%s1228_s4 + $0xb0] sm:$0xff] %v373_v35  ;;  %438 = vst [vmem:[%s1228_s4 + $0xb8] sm:$0xff] %v374_v36  ;;  %v118_v49 = vmul.f32 %v516_v1, %v47_v33  ;;  %v119_v50 = vmul.f32 %v516_v1, %v48_v34  ;;  %v375_v52 = vmax.f32 %v311_v41, 0.0  ;;  %v313_v53 = vadd.f32 %v249_v38, %v185_v42  ;;  %v260_v34 = vld [vmem:[%s1225_s1 + $0x128] sm:$0xff]  ;;  %v57_v37 = vld [vmem:[%s1224_s0 + $0x140] sm:$0xff] }
  0x21   :  { %v314_v54 = vadd.f32 %v250_v39, %v186_v43  ;;  %v188_v55 = vadd.f32 %v521_v2, %v117_v45  ;;  %v376_v59 = vmax.f32 %v312_v46, 0.0  ;;  %v315_v60 = vadd.f32 %v251_v44, %v187_v47  ;;  %v261_v42 = vld [vmem:[%s1225_s1 + $0x130] sm:$0xff]  ;;  %v262_v43 = vld [vmem:[%s1225_s1 + $0x138] sm:$0xff]  ;;  %v58_v44 = vld [vmem:[%s1224_s0 + $0x148] sm:$0xff] }
  0x22   :  { %v189_v61 = vadd.f32 %v521_v2, %v118_v49  ;;  %v190_v62 = vadd.f32 %v521_v2, %v119_v50  ;;  %439 = vst [vmem:[%s1228_s4 + $0xc0] sm:$0xff] %v375_v52  ;;  %v377_v3 = vmax.f32 %v313_v53, 0.0  ;;  %v120_v6 = vmul.f32 %v516_v1, %v49_v51  ;;  %v59_v49 = vld [vmem:[%s1224_s0 + $0x150] sm:$0xff]  ;;  %v60_v50 = vld [vmem:[%s1224_s0 + $0x158] sm:$0xff] }
  0x23   :  { %v378_v4 = vmax.f32 %v314_v54, 0.0  ;;  %v316_v5 = vadd.f32 %v252_v48, %v188_v55  ;;  %440 = vst [vmem:[%s1228_s4 + $0xc8] sm:$0xff] %v376_v59  ;;  %v379_v8 = vmax.f32 %v315_v60, 0.0  ;;  %v121_v12 = vmul.f32 %v516_v1, %v50_v58  ;;  %v61_v55 = vld [vmem:[%s1224_s0 + $0x160] sm:$0xff] }
  0x24   :  { %v317_v9 = vadd.f32 %v253_v56, %v189_v61  ;;  %v318_v10 = vadd.f32 %v254_v57, %v190_v62  ;;  %441 = vst [vmem:[%s1228_s4 + $0xd0] sm:$0xff] %v377_v3  ;;  %v191_v15 = vadd.f32 %v521_v2, %v120_v6  ;;  %v122_v17 = vmul.f32 %v516_v1, %v51_v63  ;;  %v263_v59 = vld [vmem:[%s1225_s1 + $0x140] sm:$0xff]  ;;  %v62_v61 = vld [vmem:[%s1224_s0 + $0x168] sm:$0xff]  ;;  %v64_v6 = vld [vmem:[%s1224_s0 + $0x178] sm:$0xff] }
  0x25   :  { %442 = vst [vmem:[%s1228_s4 + $0xd8] sm:$0xff] %v378_v4  ;;  %v380_v14 = vmax.f32 %v316_v5, 0.0  ;;  %v123_v18 = vmul.f32 %v516_v1, %v52_v0  ;;  %443 = vst [vmem:[%s1228_s4 + $0xe0] sm:$0xff] %v379_v8  ;;  %v192_v23 = vadd.f32 %v521_v2, %v121_v12  ;;  %v124_v26 = vmul.f32 %v516_v1, %v53_v7  ;;  %v264_v0 = vld [vmem:[%s1225_s1 + $0x148] sm:$0xff]  ;;  %v63_v5 = vld [vmem:[%s1224_s0 + $0x170] sm:$0xff] }
  0x26   :  { %v381_v21 = vmax.f32 %v317_v9, 0.0  ;;  %v382_v22 = vmax.f32 %v318_v10, 0.0  ;;  %v319_v27 = vadd.f32 %v255_v11, %v191_v15  ;;  %v193_v28 = vadd.f32 %v521_v2, %v122_v17  ;;  %v265_v10 = vld [vmem:[%s1225_s1 + $0x150] sm:$0xff]  ;;  %v266_v11 = vld [vmem:[%s1225_s1 + $0x158] sm:$0xff] }
  0x27   :  { %444 = vst [vmem:[%s1228_s4 + $0xe8] sm:$0xff] %v380_v14  ;;  %v194_v29 = vadd.f32 %v521_v2, %v123_v18  ;;  %v125_v31 = vmul.f32 %v516_v1, %v54_v13  ;;  %v320_v32 = vadd.f32 %v256_v16, %v192_v23  ;;  %v195_v33 = vadd.f32 %v521_v2, %v124_v26  ;;  %v267_v16 = vld [vmem:[%s1225_s1 + $0x160] sm:$0xff] }
  0x28   :  { %445 = vst [vmem:[%s1228_s4 + $0xf0] sm:$0xff] %v381_v21  ;;  %446 = vst [vmem:[%s1228_s4 + $0xf8] sm:$0xff] %v382_v22  ;;  %v126_v35 = vmul.f32 %v516_v1, %v55_v19  ;;  %v127_v36 = vmul.f32 %v516_v1, %v56_v20  ;;  %v383_v38 = vmax.f32 %v319_v27, 0.0  ;;  %v321_v39 = vadd.f32 %v257_v24, %v193_v28  ;;  %v268_v20 = vld [vmem:[%s1225_s1 + $0x168] sm:$0xff]  ;;  %v65_v23 = vld [vmem:[%s1224_s0 + $0x180] sm:$0xff] }
  0x29   :  { %v322_v40 = vadd.f32 %v258_v25, %v194_v29  ;;  %v196_v41 = vadd.f32 %v521_v2, %v125_v31  ;;  %v384_v45 = vmax.f32 %v320_v32, 0.0  ;;  %v323_v46 = vadd.f32 %v259_v30, %v195_v33  ;;  %v269_v28 = vld [vmem:[%s1225_s1 + $0x170] sm:$0xff]  ;;  %v270_v29 = vld [vmem:[%s1225_s1 + $0x178] sm:$0xff]  ;;  %v66_v30 = vld [vmem:[%s1224_s0 + $0x188] sm:$0xff] }
  0x2a   :  { %v197_v47 = vadd.f32 %v521_v2, %v126_v35  ;;  %v198_v48 = vadd.f32 %v521_v2, %v127_v36  ;;  %447 = vst [vmem:[%s1228_s4 + $0x100] sm:$0xff] %v383_v38  ;;  %v385_v51 = vmax.f32 %v321_v39, 0.0  ;;  %v128_v54 = vmul.f32 %v516_v1, %v57_v37  ;;  %v67_v35 = vld [vmem:[%s1224_s0 + $0x190] sm:$0xff]  ;;  %v68_v36 = vld [vmem:[%s1224_s0 + $0x198] sm:$0xff] }
  0x2b   :  { %v386_v52 = vmax.f32 %v322_v40, 0.0  ;;  %v324_v53 = vadd.f32 %v260_v34, %v196_v41  ;;  %448 = vst [vmem:[%s1228_s4 + $0x108] sm:$0xff] %v384_v45  ;;  %v387_v56 = vmax.f32 %v323_v46, 0.0  ;;  %v129_v60 = vmul.f32 %v516_v1, %v58_v44  ;;  %v69_v41 = vld [vmem:[%s1224_s0 + $0x1a0] sm:$0xff] }
  0x2c   :  { %v325_v57 = vadd.f32 %v261_v42, %v197_v47  ;;  %v326_v58 = vadd.f32 %v262_v43, %v198_v48  ;;  %449 = vst [vmem:[%s1228_s4 + $0x110] sm:$0xff] %v385_v51  ;;  %v199_v63 = vadd.f32 %v521_v2, %v128_v54  ;;  %v130_v3 = vmul.f32 %v516_v1, %v59_v49  ;;  %v271_v45 = vld [vmem:[%s1225_s1 + $0x180] sm:$0xff]  ;;  %v70_v47 = vld [vmem:[%s1224_s0 + $0x1a8] sm:$0xff]  ;;  %v72_v54 = vld [vmem:[%s1224_s0 + $0x1b8] sm:$0xff] }
  0x2d   :  { %450 = vst [vmem:[%s1228_s4 + $0x118] sm:$0xff] %v386_v52  ;;  %v388_v62 = vmax.f32 %v324_v53, 0.0  ;;  %v131_v4 = vmul.f32 %v516_v1, %v60_v50  ;;  %451 = vst [vmem:[%s1228_s4 + $0x120] sm:$0xff] %v387_v56  ;;  %v200_v9 = vadd.f32 %v521_v2, %v129_v60  ;;  %v132_v12 = vmul.f32 %v516_v1, %v61_v55  ;;  %v272_v50 = vld [vmem:[%s1225_s1 + $0x188] sm:$0xff]  ;;  %v71_v53 = vld [vmem:[%s1224_s0 + $0x1b0] sm:$0xff] }
  0x2e   :  { %v389_v7 = vmax.f32 %v325_v57, 0.0  ;;  %v390_v8 = vmax.f32 %v326_v58, 0.0  ;;  %v327_v13 = vadd.f32 %v263_v59, %v199_v63  ;;  %v201_v14 = vadd.f32 %v521_v2, %v130_v3  ;;  %v273_v58 = vld [vmem:[%s1225_s1 + $0x190] sm:$0xff]  ;;  %v274_v59 = vld [vmem:[%s1225_s1 + $0x198] sm:$0xff] }
  0x2f   :  { %452 = vst [vmem:[%s1228_s4 + $0x128] sm:$0xff] %v388_v62  ;;  %v202_v15 = vadd.f32 %v521_v2, %v131_v4  ;;  %v133_v17 = vmul.f32 %v516_v1, %v62_v61  ;;  %v328_v18 = vadd.f32 %v264_v0, %v200_v9  ;;  %v203_v19 = vadd.f32 %v521_v2, %v132_v12  ;;  %v275_v0 = vld [vmem:[%s1225_s1 + $0x1a0] sm:$0xff] }
  0x30   :  { %453 = vst [vmem:[%s1228_s4 + $0x130] sm:$0xff] %v389_v7  ;;  %454 = vst [vmem:[%s1228_s4 + $0x138] sm:$0xff] %v390_v8  ;;  %v134_v21 = vmul.f32 %v516_v1, %v63_v5  ;;  %v135_v22 = vmul.f32 %v516_v1, %v64_v6  ;;  %v391_v24 = vmax.f32 %v327_v13, 0.0  ;;  %v329_v25 = vadd.f32 %v265_v10, %v201_v14  ;;  %v276_v6 = vld [vmem:[%s1225_s1 + $0x1a8] sm:$0xff]  ;;  %v73_v9 = vld [vmem:[%s1224_s0 + $0x1c0] sm:$0xff] }
  0x31   :  { %v330_v26 = vadd.f32 %v266_v11, %v202_v15  ;;  %v204_v27 = vadd.f32 %v521_v2, %v133_v17  ;;  %v392_v31 = vmax.f32 %v328_v18, 0.0  ;;  %v331_v32 = vadd.f32 %v267_v16, %v203_v19  ;;  %v277_v14 = vld [vmem:[%s1225_s1 + $0x1b0] sm:$0xff]  ;;  %v278_v15 = vld [vmem:[%s1225_s1 + $0x1b8] sm:$0xff]  ;;  %v74_v16 = vld [vmem:[%s1224_s0 + $0x1c8] sm:$0xff] }
  0x32   :  { %v205_v33 = vadd.f32 %v521_v2, %v134_v21  ;;  %v206_v34 = vadd.f32 %v521_v2, %v135_v22  ;;  %455 = vst [vmem:[%s1228_s4 + $0x140] sm:$0xff] %v391_v24  ;;  %v393_v37 = vmax.f32 %v329_v25, 0.0  ;;  %v136_v40 = vmul.f32 %v516_v1, %v65_v23  ;;  %v75_v21 = vld [vmem:[%s1224_s0 + $0x1d0] sm:$0xff]  ;;  %v76_v22 = vld [vmem:[%s1224_s0 + $0x1d8] sm:$0xff] }
  0x33   :  { %v394_v38 = vmax.f32 %v330_v26, 0.0  ;;  %v332_v39 = vadd.f32 %v268_v20, %v204_v27  ;;  %456 = vst [vmem:[%s1228_s4 + $0x148] sm:$0xff] %v392_v31  ;;  %v395_v42 = vmax.f32 %v331_v32, 0.0  ;;  %v137_v46 = vmul.f32 %v516_v1, %v66_v30  ;;  %v77_v27 = vld [vmem:[%s1224_s0 + $0x1e0] sm:$0xff] }
  0x34   :  { %v333_v43 = vadd.f32 %v269_v28, %v205_v33  ;;  %v334_v44 = vadd.f32 %v270_v29, %v206_v34  ;;  %457 = vst [vmem:[%s1228_s4 + $0x150] sm:$0xff] %v393_v37  ;;  %v207_v49 = vadd.f32 %v521_v2, %v136_v40  ;;  %v138_v51 = vmul.f32 %v516_v1, %v67_v35  ;;  %v279_v31 = vld [vmem:[%s1225_s1 + $0x1c0] sm:$0xff]  ;;  %v78_v33 = vld [vmem:[%s1224_s0 + $0x1e8] sm:$0xff]  ;;  %v80_v40 = vld [vmem:[%s1224_s0 + $0x1f8] sm:$0xff] }
  0x35   :  { %458 = vst [vmem:[%s1228_s4 + $0x158] sm:$0xff] %v394_v38  ;;  %v396_v48 = vmax.f32 %v332_v39, 0.0  ;;  %v139_v52 = vmul.f32 %v516_v1, %v68_v36  ;;  %459 = vst [vmem:[%s1228_s4 + $0x160] sm:$0xff] %v395_v42  ;;  %v208_v57 = vadd.f32 %v521_v2, %v137_v46  ;;  %v140_v60 = vmul.f32 %v516_v1, %v69_v41  ;;  %v280_v36 = vld [vmem:[%s1225_s1 + $0x1c8] sm:$0xff]  ;;  %v79_v39 = vld [vmem:[%s1224_s0 + $0x1f0] sm:$0xff] }
  0x36   :  { %v397_v55 = vmax.f32 %v333_v43, 0.0  ;;  %v398_v56 = vmax.f32 %v334_v44, 0.0  ;;  %v335_v61 = vadd.f32 %v271_v45, %v207_v49  ;;  %v209_v62 = vadd.f32 %v521_v2, %v138_v51  ;;  %v281_v44 = vld [vmem:[%s1225_s1 + $0x1d0] sm:$0xff]  ;;  %v282_v45 = vld [vmem:[%s1225_s1 + $0x1d8] sm:$0xff] }
  0x37   :  { %460 = vst [vmem:[%s1228_s4 + $0x168] sm:$0xff] %v396_v48  ;;  %v210_v63 = vadd.f32 %v521_v2, %v139_v52  ;;  %v141_v3 = vmul.f32 %v516_v1, %v70_v47  ;;  %v336_v4 = vadd.f32 %v272_v50, %v208_v57  ;;  %v211_v5 = vadd.f32 %v521_v2, %v140_v60  ;;  %v283_v50 = vld [vmem:[%s1225_s1 + $0x1e0] sm:$0xff] }
  0x38   :  { %461 = vst [vmem:[%s1228_s4 + $0x170] sm:$0xff] %v397_v55  ;;  %462 = vst [vmem:[%s1228_s4 + $0x178] sm:$0xff] %v398_v56  ;;  %v142_v7 = vmul.f32 %v516_v1, %v71_v53  ;;  %v143_v8 = vmul.f32 %v516_v1, %v72_v54  ;;  %v399_v10 = vmax.f32 %v335_v61, 0.0  ;;  %v337_v11 = vadd.f32 %v273_v58, %v209_v62  ;;  %v284_v54 = vld [vmem:[%s1225_s1 + $0x1e8] sm:$0xff]  ;;  %v285_v61 = vld [vmem:[%s1225_s1 + $0x1f0] sm:$0xff] }
  0x39   :  { %v338_v12 = vadd.f32 %v274_v59, %v210_v63  ;;  %v212_v13 = vadd.f32 %v521_v2, %v141_v3  ;;  %v400_v17 = vmax.f32 %v336_v4, 0.0  ;;  %v339_v18 = vadd.f32 %v275_v0, %v211_v5  ;;  %v286_v62 = vld [vmem:[%s1225_s1 + $0x1f8] sm:$0xff] }
  0x3a   :  { %v213_v19 = vadd.f32 %v521_v2, %v142_v7  ;;  %v214_v20 = vadd.f32 %v521_v2, %v143_v8  ;;  %463 = vst [vmem:[%s1228_s4 + $0x180] sm:$0xff] %v399_v10  ;;  %v401_v23 = vmax.f32 %v337_v11, 0.0  ;;  %v144_v26 = vmul.f32 %v516_v1, %v73_v9 }
  0x3b   :  { %v402_v24 = vmax.f32 %v338_v12, 0.0  ;;  %v340_v25 = vadd.f32 %v276_v6, %v212_v13  ;;  %464 = vst [vmem:[%s1228_s4 + $0x188] sm:$0xff] %v400_v17  ;;  %v403_v28 = vmax.f32 %v339_v18, 0.0  ;;  %v145_v32 = vmul.f32 %v516_v1, %v74_v16 }
  0x3c   :  { %v341_v29 = vadd.f32 %v277_v14, %v213_v19  ;;  %v342_v30 = vadd.f32 %v278_v15, %v214_v20  ;;  %465 = vst [vmem:[%s1228_s4 + $0x190] sm:$0xff] %v401_v23  ;;  %v215_v35 = vadd.f32 %v521_v2, %v144_v26  ;;  %v146_v37 = vmul.f32 %v516_v1, %v75_v21 }
  0x3d   :  { %466 = vst [vmem:[%s1228_s4 + $0x198] sm:$0xff] %v402_v24  ;;  %v404_v34 = vmax.f32 %v340_v25, 0.0  ;;  %v147_v38 = vmul.f32 %v516_v1, %v76_v22  ;;  %467 = vst [vmem:[%s1228_s4 + $0x1a0] sm:$0xff] %v403_v28  ;;  %v216_v43 = vadd.f32 %v521_v2, %v145_v32  ;;  %v148_v46 = vmul.f32 %v516_v1, %v77_v27 }
  0x3e   :  { %v405_v41 = vmax.f32 %v341_v29, 0.0  ;;  %v406_v42 = vmax.f32 %v342_v30, 0.0  ;;  %v343_v47 = vadd.f32 %v279_v31, %v215_v35  ;;  %v217_v48 = vadd.f32 %v521_v2, %v146_v37 }
  0x3f   :  { %468 = vst [vmem:[%s1228_s4 + $0x1a8] sm:$0xff] %v404_v34  ;;  %v218_v49 = vadd.f32 %v521_v2, %v147_v38  ;;  %v149_v51 = vmul.f32 %v516_v1, %v78_v33  ;;  %v344_v52 = vadd.f32 %v280_v36, %v216_v43  ;;  %v219_v53 = vadd.f32 %v521_v2, %v148_v46 }
  0x40   :  { %469 = vst [vmem:[%s1228_s4 + $0x1b0] sm:$0xff] %v405_v41  ;;  %470 = vst [vmem:[%s1228_s4 + $0x1b8] sm:$0xff] %v406_v42  ;;  %v150_v55 = vmul.f32 %v516_v1, %v79_v39  ;;  %v151_v56 = vmul.f32 %v516_v1, %v80_v40  ;;  %v407_v57 = vmax.f32 %v343_v47, 0.0  ;;  %v345_v58 = vadd.f32 %v281_v44, %v217_v48 }
  0x41   :  { %v346_v59 = vadd.f32 %v282_v45, %v218_v49  ;;  %v220_v60 = vadd.f32 %v521_v2, %v149_v51  ;;  %v408_v63 = vmax.f32 %v344_v52, 0.0  ;;  %v347_v0 = vadd.f32 %v283_v50, %v219_v53 }
  0x42   :  { %v221_v3 = vadd.f32 %v521_v2, %v150_v55  ;;  %v222_v4 = vadd.f32 %v521_v2, %v151_v56  ;;  %471 = vst [vmem:[%s1228_s4 + $0x1c0] sm:$0xff] %v407_v57  ;;  %v409_v1 = vmax.f32 %v345_v58, 0.0 }
  0x43   :  { %v410_v5 = vmax.f32 %v346_v59, 0.0  ;;  %v348_v6 = vadd.f32 %v284_v54, %v220_v60  ;;  %472 = vst [vmem:[%s1228_s4 + $0x1c8] sm:$0xff] %v408_v63  ;;  %v411_v7 = vmax.f32 %v347_v0, 0.0 }
  0x44   :  { %v349_v8 = vadd.f32 %v285_v61, %v221_v3  ;;  %v350_v9 = vadd.f32 %v286_v62, %v222_v4  ;;  %473 = vst [vmem:[%s1228_s4 + $0x1d0] sm:$0xff] %v409_v1 }
  0x45   :  { %474 = vst [vmem:[%s1228_s4 + $0x1d8] sm:$0xff] %v410_v5  ;;  %v412_v2 = vmax.f32 %v348_v6, 0.0  ;;  %475 = vst [vmem:[%s1228_s4 + $0x1e0] sm:$0xff] %v411_v7 }
  0x46   :  { %v413_v10 = vmax.f32 %v349_v8, 0.0  ;;  %v414_v11 = vmax.f32 %v350_v9, 0.0 }
  0x47   :  { %476 = vst [vmem:[%s1228_s4 + $0x1e8] sm:$0xff] %v412_v2 }
  0x48   :  { %477 = vst [vmem:[%s1228_s4 + $0x1f0] sm:$0xff] %v413_v10  ;;  %478 = vst [vmem:[%s1228_s4 + $0x1f8] sm:$0xff] %v414_v11 }

// kernel: basic_block_forward.4
= control target key start
LH: loop header
LB: loop body
LE: loop exit
PB: predicated region body
PF: predicated region fallthrough
CT: control target
= control target key end

     0   :  { %s2157_s18 = smov 0   ;;  %s2589_s0 = inlined_call_operand.vmem [shape: f32[2,16,16,128], index: 0, kind: input, shape index: {}]   ;;  %s2590_s1 = inlined_call_operand.vmem [shape: f32[1,128], index: 1, kind: input, shape index: {}]   ;;  %s2591_s2 = inlined_call_operand.vmem [shape: f32[1,128], index: 2, kind: input, shape index: {}]   ;;  %s2592_s3 = inlined_call_operand.vmem [shape: bf16[9,128,128], index: 3, kind: input, shape index: {}]   ;;  %s2593_s4 = inlined_call_operand.vmem [shape: f32[2,16,16,128], index: 4, kind: output, shape index: {0}]   ;;  %s2594_s5 = inlined_call_operand.vmem [shape: f32[2,2,128], index: 5, kind: output, shape index: {1}]  }
   0x1 LB: > { %s1468_s19 = sadd.s32 4294967295, %s2106_s18   ;;  %p1472_p0 = scmp.ge.s32.totalorder %s2106_s18, 1  ;;  %s2106_s18 = sphi %s2157_s18, %s16_s18  }
   0x2   : > { %p190_p1 = scmp.lt.s32.totalorder %s2106_s18, 3 }
   0x4   : > { %p191_p2 = pnand %p1472_p0, %p190_p1 }
   0x5   : > { %p222_p3 = scmp.lt.s32.totalorder (!%p191_p2), %s1468_s19, 1  ;;  %s2108_s10 = smov (!%p191_p2), 0  }
   0x6   : > { %194 = sbr.rel (%p191_p2) target bundleno = 407 (0x197), region = 36 }
   0xb   : > { %v1479_v0 = vld [vmem:[%s2590_s1] ss:$0 sm:$0xff]  ;;  %v2124_v2 = vmov 0   ;;  %s2602_s19 = smov (!%p222_p3, %s1468_s19), 1 }
   0xc   : > { %v1480_v1 = vld [vmem:[%s2591_s2] ss:$0 sm:$0xff]  ;;  %237 = vst [vmem:[#allocation2] sm:$0xf] %v2124_v2  ;;  %238 = vst [vmem:[#allocation2 + $0x4] sm:$0xf] %v2124_v2 }
   0xd   : > { %240 = vst [vmem:[#allocation2 + $0x88] sm:$0xf] %v2124_v2  ;;  %241 = vst [vmem:[#allocation2 + $0x8c] sm:$0xf] %v2124_v2  ;;  %s1694_s24 = sshll.u32 %s2602_s19, 8  ;;  %s1477_s25 = sshll.u32 %s2602_s19, 1 }
   0xe   : > { %s226_s28 = scalar_lea.vmem %s2589_s0, %s1694_s24  ;;  %s2177_s6 = scalar_lea.vmem %s2593_s4, %s1694_s24 }
   0xf   : > { %s2182_s9 = scalar_lea.vmem %s2594_s5, %s1477_s25 }
  0x10 LB: >> { %s1478_s11 = sshll.u32 %s2110_s10, 4  ;;  %s1483_s13 = sshll.u32 %s2110_s10, 3  ;;  %s2110_s10 = sphi %s2108_s10, %s249_s10  }
  0x11   : >> { %s251_s12 = scalar_lea.vmem %s226_s28, %s1478_s11  ;;  %s1409_s14 = scalar_lea.vmem [#allocation2], %s1483_s13 }
  0x12   : >> { %v252_v3 = vld [vmem:[%s251_s12] sm:$0xff]  ;;  %v253_v4 = vld [vmem:[%s251_s12 + $0x8] sm:$0xff]  ;;  %s249_s10 = sadd.s32 1, %s2110_s10  }
  0x13   : >> { %v260_v5 = vmul.f32 %v1479_v0, %v252_v3  ;;  %v261_v6 = vmul.f32 %v1479_v0, %v253_v4  ;;  %p246_p4 = scmp.ge.s32.totalorder %s249_s10, 16  }
  0x14   : > { %v2184_v12 = vmov (%p246_p4), 0.0   ;;  %v2186_v13 = vmov (%p246_p4), 0.0   ;;  %s2188_s15 = smov (%p246_p4), 0  }
  0x15   : >> { %v268_v7 = vadd.f32 %v1480_v1, %v260_v5  ;;  %v269_v8 = vadd.f32 %v1480_v1, %v261_v6 }
  0x17   : >> { %v270_v9 = vmax.f32 %v268_v7, 0.0  ;;  %v271_v10 = vmax.f32 %v269_v8, 0.0  ;;  %248 = sbr.rel (!%p246_p4) target bundleno = 16 (0x10), region = 105 }
  0x19   : >> { %v1702_v11 = vpack.c.bf16 %v271_v10, %v270_v9 }
  0x1b   : >> { %1704 = vst [vmem:[%s1409_s14 + $0x8] sm:$0xff] %v1702_v11  }
  0x1c LB: >> { %v2009_v14 = vld [vmem:[%s2592_s3 + $0x78] sm:$0xff]   ;;  %v2125_v15 = vmov 0.0   ;;  %v2011_v17 = vld [vmem:[%s2592_s3 + $0x70] sm:$0xff]   ;;  %vm2126_vm0 = vmmov 0   ;;  %v2013_v19 = vld [vmem:[%s2592_s3 + $0x68] sm:$0xff]   ;;  %s1698_s7 = sshll.u32 %s2122_s15, 3  ;;  %s2122_s15 = sphi %s2188_s15, %s291_s15   ;;  %v2118_v13 = vphi %v2186_v13, %v2600_v13   ;;  %v2114_v12 = vphi %v2184_v12, %v2599_v12  }
  0x1d   : >> { %1786 = vmatprep.subr.bf16.mxu0 %v2125_v15  ;;  %1806 = vmatprep.subr.bf16.mxu1 %v2125_v15  ;;  %v2010_v16 = vld [vmem:[%s2592_s3 + $0x38] sm:$0xff]   ;;  %v2012_v18 = vld [vmem:[%s2592_s3 + $0x30] sm:$0xff]   ;;  %v2014_v20 = vld [vmem:[%s2592_s3 + $0x28] sm:$0xff]   ;;  %s2244_s16 = scalar_lea.vmem [#allocation2], %s1698_s7  ;;  %vm316_vm1 = vcmask 1040384   ;;  %vm323_vm4 = vcmask 1047552  }
  0x1e   : >> { %1787 = vmatpush3.bf16.msra.mxu0 %v2009_v14  ;;  %1802 = vmatprep.mubr.msk.bf16.mxu0 %vm2126_vm0, %v2125_v15  ;;  %v2015_v21 = vld [vmem:[%s2592_s3 + $0x60] sm:$0xff]   ;;  %v2017_v23 = vld [vmem:[%s2592_s3 + $0x58] sm:$0xff]   ;;  %v2019_v26 = vld [vmem:[%s2592_s3 + $0x50] sm:$0xff]   ;;  %vm317_vm2 = vsmask.f32 256  ;;  %s1691_s17 = sshll.u32 %s2122_s15, 4 }
  0x1f   : >> { %1807 = vmatpush3.bf16.msra.mxu1 %v2010_v16  ;;  %1788 = vmatprep.subr.bf16.mxu0 %v2125_v15  ;;  %v2016_v22 = vld [vmem:[%s2592_s3 + $0x20] sm:$0xff]   ;;  %v2018_v24 = vld [vmem:[%s2592_s3 + $0x18] sm:$0xff]   ;;  %v2020_v27 = vld [vmem:[%s2592_s3 + $0x10] sm:$0xff]   ;;  %vm324_vm5 = vsmask.f32 7424  ;;  %s1334_s19 = scalar_lea.vmem %s2177_s6, %s1691_s17  ;;  %s291_s15 = sadd.s32 1, %s2122_s15  }
  0x20   : >> { %1808 = vmatprep.subr.bf16.mxu1 %v2125_v15  ;;  %1822 = vmatprep.mubr.msk.bf16.mxu1 %vm2126_vm0, %v2125_v15  ;;  %v2021_v29 = vld [vmem:[%s2592_s3 + $0x48] sm:$0xff]   ;;  %v2023_v33 = vld [vmem:[%s2592_s3 + $0x40] sm:$0xff]   ;;  %vm2277_vm3 = vmand %vm316_vm1, %vm317_vm2  ;;  %p288_p5 = scmp.ge.s32.totalorder %s291_s15, 16  }
  0x21   : >> { %v2022_v30 = vld [vmem:[%s2592_s3 + $0x8] sm:$0xff]   ;;  %v2024_v34 = vld [vmem:[%s2592_s3] sm:$0xff]   ;;  %v2026_v37 = vld [vmem:[%s2592_s3 + $0xb8] sm:$0xff]  }
  0x22   : >> { %1789 = vmatpush3.bf16.msra.mxu0 %v2011_v17  ;;  %v2247_v25 = vld [vmem:[%s2244_s16] sm:$0xff]   ;;  %v2027_v39 = vld [vmem:[%s2592_s3 + $0xf8] sm:$0xff]   ;;  %v2028_v40 = vld [vmem:[%s2592_s3 + $0xb0] sm:$0xff]  }
  0x23   : >> { %1809 = vmatpush3.bf16.msra.mxu1 %v2012_v18  ;;  %1790 = vmatprep.subr.bf16.mxu0 %v2125_v15  ;;  %v309_v28 = vshrl.u32 %v2247_v25, 16  ;;  %v312_v32 = vshll.u32 %v2247_v25, 16  ;;  %v2029_v41 = vld [vmem:[%s2592_s3 + $0xf0] sm:$0xff]   ;;  %v2030_v42 = vld [vmem:[%s2592_s3 + $0xa8] sm:$0xff]   ;;  %v2032_v44 = vld [vmem:[%s2592_s3 + $0xa0] sm:$0xff]  }
  0x24   : >> { %1810 = vmatprep.subr.bf16.mxu1 %v2125_v15  ;;  %v2031_v43 = vld [vmem:[%s2592_s3 + $0xe8] sm:$0xff]   ;;  %v2033_v45 = vld [vmem:[%s2592_s3 + $0xe0] sm:$0xff]   ;;  %v2034_v46 = vld [vmem:[%s2592_s3 + $0x98] sm:$0xff]  }
  0x25   : >> { %v311_v31 = vrot.slane %v309_v28, 7  ;;  %v2035_v47 = vld [vmem:[%s2592_s3 + $0xd8] sm:$0xff]   ;;  %v2328_v48 = vld [vmem:[%s2244_s16 + $0x8] sm:$0xff]   ;;  %v2036_v49 = vld [vmem:[%s2592_s3 + $0x90] sm:$0xff]   ;;  %v320_v54 = vrot.slane %v312_v32, 1 }
  0x26   : >> { %1791 = vmatpush3.bf16.msra.mxu0 %v2013_v19  ;;  %v2037_v50 = vld [vmem:[%s2592_s3 + $0xd0] sm:$0xff]   ;;  %v653_v51 = vshrl.u32 %v2328_v48, 16  ;;  %v2038_v52 = vld [vmem:[%s2592_s3 + $0x88] sm:$0xff]   ;;  %v656_v56 = vshll.u32 %v2328_v48, 16  ;;  %v2040_v57 = vld [vmem:[%s2592_s3 + $0x80] sm:$0xff]  }
  0x27   : >> { %1811 = vmatpush3.bf16.msra.mxu1 %v2014_v20  ;;  %1792 = vmatprep.subr.bf16.mxu0 %v2125_v15  ;;  %v314_v35 = vor.u32 %v312_v32, %v311_v31  ;;  %v2039_v53 = vld [vmem:[%s2592_s3 + $0xc8] sm:$0xff]   ;;  %v2041_v58 = vld [vmem:[%s2592_s3 + $0xc0] sm:$0xff]   ;;  %v321_v59 = vor.u32 %v320_v54, %v309_v28  ;;  %vm2361_vm6 = vmand %vm323_vm4, %vm324_vm5 }
  0x28   : >> { %1812 = vmatprep.subr.bf16.mxu1 %v2125_v15  ;;  %v655_v55 = vrot.slane %v653_v51, 7  ;;  %v2042_v63 = vld [vmem:[%s2592_s3 + $0x138] sm:$0xff]   ;;  %v2045_v2 = vld [vmem:[%s2592_s3 + $0x130] sm:$0xff]   ;;  %v2047_v5 = vld [vmem:[%s2592_s3 + $0x128] sm:$0xff]  }
  0x29   : >> { %v319_v38 = vsel %vm2277_vm3, 0, %v314_v35  ;;  %v326_v62 = vsel %vm2361_vm6, %v321_v59, 0  ;;  %v2044_v1 = vld [vmem:[%s2592_s3 + $0x178] sm:$0xff]   ;;  %v2046_v3 = vld [vmem:[%s2592_s3 + $0x170] sm:$0xff]   ;;  %v2048_v6 = vld [vmem:[%s2592_s3 + $0x168] sm:$0xff]  }
  0x2a   : >> { %1793 = vmatpush3.bf16.msra.mxu0 %v2015_v21  ;;  %v658_v61 = vor.u32 %v656_v56, %v655_v55  ;;  %v2391_v4 = vld [vmem:[%s2244_s16 + $0x10] sm:$0xff]   ;;  %v2049_v11 = vld [vmem:[%s2592_s3 + $0x120] sm:$0xff]   ;;  %v2051_v20 = vld [vmem:[%s2592_s3 + $0x118] sm:$0xff]  }
  0x2b   : >> { %1813 = vmatpush3.bf16.msra.mxu1 %v2016_v22  ;;  %1794 = vmatprep.subr.bf16.mxu0 %v2125_v15  ;;  %v996_v7 = vshrl.u32 %v2391_v4, 16  ;;  %v999_v8 = vshll.u32 %v2391_v4, 16  ;;  %v2050_v16 = vld [vmem:[%s2592_s3 + $0x160] sm:$0xff]   ;;  %v2052_v21 = vld [vmem:[%s2592_s3 + $0x158] sm:$0xff]   ;;  %v2053_v22 = vld [vmem:[%s2592_s3 + $0x110] sm:$0xff]  }
  0x2c   : >> { %1814 = vmatprep.subr.bf16.mxu1 %v2125_v15  ;;  %v660_v0 = vsel %vm2277_vm3, 0, %v658_v61  ;;  %v2058_v28 = vld [vmem:[%s2592_s3 + $0x140] sm:$0xff]   ;;  %v2060_v32 = vld [vmem:[%s2592_s3 + $0x1f8] sm:$0xff]   ;;  %v2063_v35 = vld [vmem:[%s2592_s3 + $0x1a8] sm:$0xff]  }
  0x2d   : >> { %v998_v9 = vrot.slane %v996_v7, 7  ;;  %v1004_v10 = vrot.slane %v999_v8, 1  ;;  %v2078_v36 = vld [vmem:[%s2592_s3 + $0x228] sm:$0xff]   ;;  %v2083_v54 = vld [vmem:[%s2592_s3 + $0x200] sm:$0xff]  }
  0x2e   : >> { %1795 = vmatpush3.bf16.msra.mxu0 %v2017_v23  ;;  %v2054_v23 = vld [vmem:[%s2592_s3 + $0x150] sm:$0xff]  }
  0x2f   : >> { %1815 = vmatpush3.bf16.msra.mxu1 %v2018_v24  ;;  %1796 = vmatprep.subr.bf16.mxu0 %v2125_v15  ;;  %v2408_v14 = vor.u32 %v999_v8, %v998_v9  ;;  %v2414_v17 = vor.u32 %v1004_v10, %v996_v7  ;;  %v2055_v24 = vld [vmem:[%s2592_s3 + $0x108] sm:$0xff]  }
  0x30   : >> { %1816 = vmatprep.subr.bf16.mxu1 %v2125_v15 }
  0x31   : >> { %v1003_v18 = vsel %vm2277_vm3, 0, %v2408_v14  ;;  %v1007_v19 = vsel %vm2361_vm6, %v2414_v17, 0 }
  0x32   : >> { %1797 = vmatpush3.bf16.msra.mxu0 %v2019_v26  ;;  %v661_v26 = vrot.slane %v656_v56, 1 }
  0x33   : >> { %1817 = vmatpush3.bf16.msra.mxu1 %v2020_v27  ;;  %1798 = vmatprep.subr.bf16.mxu0 %v2125_v15  ;;  %v2057_v27 = vld [vmem:[%s2592_s3 + $0x100] sm:$0xff]  }
  0x34   : >> { %1818 = vmatprep.subr.bf16.mxu1 %v2125_v15 }
  0x36   : >> { %1799 = vmatpush3.bf16.msra.mxu0 %v2021_v29  ;;  %v662_v29 = vor.u32 %v661_v26, %v653_v51  ;;  %v2080_v51 = vld [vmem:[%s2592_s3 + $0x218] sm:$0xff]  }
  0x37   : >> { %1819 = vmatpush3.bf16.msra.mxu1 %v2022_v30  ;;  %1800 = vmatprep.subr.bf16.mxu0 %v2125_v15  ;;  %v2059_v30 = vld [vmem:[%s2592_s3 + $0x1b8] sm:$0xff]  }
  0x38   : >> { %1820 = vmatprep.subr.bf16.mxu1 %v2125_v15  ;;  %v664_v31 = vsel %vm2361_vm6, %v662_v29, 0 }
  0x3a   : >> { %1801 = vmatpush3.bf16.msra.mxu0 %v2023_v33  ;;  %v2061_v33 = vld [vmem:[%s2592_s3 + $0x1b0] sm:$0xff]  }
  0x3b   : >> { %1821 = vmatpush3.bf16.msra.mxu1 %v2024_v34  ;;  %1826 = vmatprep.subr.bf16.mxu0 %v2125_v15  ;;  %v2062_v34 = vld [vmem:[%s2592_s3 + $0x1f0] sm:$0xff]  }
  0x3c   : >> { %1846 = vmatprep.subr.bf16.mxu1 %v2125_v15 }
  0x3d   : >> { %1803 = vmatmul.mubr.bf16.vlgmr.msra.gmra.mxu0 %v2247_v25  ;;  %v2056_v25 = vld [vmem:[%s2592_s3 + $0x148] sm:$0xff]  }
  0x3e   : >> { %1823 = vmatmul.mubr.bf16.vlgmr.msra.gmra.mxu1 %v319_v38  ;;  %1827 = vmatpush3.bf16.msra.mxu0 %v2026_v37  ;;  %v2064_v37 = vld [vmem:[%s2592_s3 + $0x1e8] sm:$0xff]   ;;  %v2065_v38 = vld [vmem:[%s2592_s3 + $0x1a0] sm:$0xff]  }
  0x3f   : >> { %1847 = vmatpush3.bf16.msra.mxu1 %v2027_v39  ;;  %1828 = vmatprep.subr.bf16.mxu0 %v2125_v15  ;;  %v2066_v39 = vld [vmem:[%s2592_s3 + $0x1e0] sm:$0xff]  }
  0x40   : >> { %1848 = vmatprep.subr.bf16.mxu1 %v2125_v15  ;;  %1842 = vmatprep.mubr.msk.bf16.mxu0 %vm2126_vm0, %v2125_v15 }
  0x41   : >> { %1862 = vmatprep.mubr.msk.bf16.mxu1 %vm2126_vm0, %v2125_v15 }
  0x42   : >> { %1829 = vmatpush3.bf16.msra.mxu0 %v2028_v40  ;;  %v2067_v40 = vld [vmem:[%s2592_s3 + $0x198] sm:$0xff]  }
  0x43   : >> { %1849 = vmatpush3.bf16.msra.mxu1 %v2029_v41  ;;  %1830 = vmatprep.subr.bf16.mxu0 %v2125_v15  ;;  %v2068_v41 = vld [vmem:[%s2592_s3 + $0x1d8] sm:$0xff]  }
  0x44   : >> { %1850 = vmatprep.subr.bf16.mxu1 %v2125_v15 }
  0x46   : >> { %1831 = vmatpush3.bf16.msra.mxu0 %v2030_v42  ;;  %v2069_v42 = vld [vmem:[%s2592_s3 + $0x190] sm:$0xff]  }
  0x47   : >> { %1851 = vmatpush3.bf16.msra.mxu1 %v2031_v43  ;;  %1832 = vmatprep.subr.bf16.mxu0 %v2125_v15  ;;  %v2070_v43 = vld [vmem:[%s2592_s3 + $0x1d0] sm:$0xff]  }
  0x48   : >> { %1852 = vmatprep.subr.bf16.mxu1 %v2125_v15 }
  0x4a   : >> { %1833 = vmatpush3.bf16.msra.mxu0 %v2032_v44  ;;  %v2071_v44 = vld [vmem:[%s2592_s3 + $0x188] sm:$0xff]  }
  0x4b   : >> { %1853 = vmatpush3.bf16.msra.mxu1 %v2033_v45  ;;  %1834 = vmatprep.subr.bf16.mxu0 %v2125_v15  ;;  %v2072_v45 = vld [vmem:[%s2592_s3 + $0x1c8] sm:$0xff]  }
  0x4c   : >> { %1854 = vmatprep.subr.bf16.mxu1 %v2125_v15 }
  0x4e   : >> { %1835 = vmatpush3.bf16.msra.mxu0 %v2034_v46  ;;  %v2073_v46 = vld [vmem:[%s2592_s3 + $0x180] sm:$0xff]  }
  0x4f   : >> { %1855 = vmatpush3.bf16.msra.mxu1 %v2035_v47  ;;  %1836 = vmatprep.subr.bf16.mxu0 %v2125_v15  ;;  %v2074_v47 = vld [vmem:[%s2592_s3 + $0x1c0] sm:$0xff]  }
  0x50   : >> { %1856 = vmatprep.subr.bf16.mxu1 %v2125_v15 }
  0x52   : >> { %1837 = vmatpush3.bf16.msra.mxu0 %v2036_v49  ;;  %v2077_v49 = vld [vmem:[%s2592_s3 + $0x230] sm:$0xff]  }
  0x53   : >> { %1857 = vmatpush3.bf16.msra.mxu1 %v2037_v50  ;;  %1838 = vmatprep.subr.bf16.mxu0 %v2125_v15  ;;  %v2079_v50 = vld [vmem:[%s2592_s3 + $0x220] sm:$0xff]  }
  0x54   : >> { %1858 = vmatprep.subr.bf16.mxu1 %v2125_v15 }
  0x56   : >> { %1839 = vmatpush3.bf16.msra.mxu0 %v2038_v52  ;;  %v2081_v52 = vld [vmem:[%s2592_s3 + $0x210] sm:$0xff]  }
  0x57   : >> { %1859 = vmatpush3.bf16.msra.mxu1 %v2039_v53  ;;  %1840 = vmatprep.subr.bf16.mxu0 %v2125_v15  ;;  %v2082_v53 = vld [vmem:[%s2592_s3 + $0x208] sm:$0xff]  }
  0x58   : >> { %1860 = vmatprep.subr.bf16.mxu1 %v2125_v15 }
  0x5a   : >> { %1841 = vmatpush3.bf16.msra.mxu0 %v2040_v57 }
  0x5b   : >> { %1861 = vmatpush3.bf16.msra.mxu1 %v2041_v58  ;;  %1866 = vmatprep.subr.bf16.mxu0 %v2125_v15 }
  0x5c   : >> { %1886 = vmatprep.subr.bf16.mxu1 %v2125_v15 }
  0x5d   : >> { %1843 = vmatmul.mubr.bf16.vlgmr.msra.gmra.mxu0 %v326_v62 }
  0x5e   : >> { %1867 = vmatpush3.bf16.msra.mxu0 %v2042_v63  ;;  %1863 = vmatmul.mubr.bf16.vlgmr.msra.gmra.mxu1 %v660_v0 }
  0x5f   : >> { %1887 = vmatpush3.bf16.msra.mxu1 %v2044_v1  ;;  %1868 = vmatprep.subr.bf16.mxu0 %v2125_v15 }
  0x60   : >> { %1888 = vmatprep.subr.bf16.mxu1 %v2125_v15  ;;  %1882 = vmatprep.mubr.msk.bf16.mxu0 %vm2126_vm0, %v2125_v15 }
  0x61   : >> { %1902 = vmatprep.mubr.msk.bf16.mxu1 %vm2126_vm0, %v2125_v15 }
  0x62   : >> { %1869 = vmatpush3.bf16.msra.mxu0 %v2045_v2 }
  0x63   : >> { %1889 = vmatpush3.bf16.msra.mxu1 %v2046_v3  ;;  %1870 = vmatprep.subr.bf16.mxu0 %v2125_v15 }
  0x64   : >> { %1890 = vmatprep.subr.bf16.mxu1 %v2125_v15 }
  0x66   : >> { %1871 = vmatpush3.bf16.msra.mxu0 %v2047_v5 }
  0x67   : >> { %1891 = vmatpush3.bf16.msra.mxu1 %v2048_v6  ;;  %1872 = vmatprep.subr.bf16.mxu0 %v2125_v15 }
  0x68   : >> { %1892 = vmatprep.subr.bf16.mxu1 %v2125_v15 }
  0x6a   : >> { %1873 = vmatpush3.bf16.msra.mxu0 %v2049_v11 }
  0x6b   : >> { %1893 = vmatpush3.bf16.msra.mxu1 %v2050_v16  ;;  %1874 = vmatprep.subr.bf16.mxu0 %v2125_v15 }
  0x6c   : >> { %1894 = vmatprep.subr.bf16.mxu1 %v2125_v15 }
  0x6e   : >> { %1875 = vmatpush3.bf16.msra.mxu0 %v2051_v20 }
  0x6f   : >> { %1895 = vmatpush3.bf16.msra.mxu1 %v2052_v21  ;;  %1876 = vmatprep.subr.bf16.mxu0 %v2125_v15 }
  0x70   : >> { %1896 = vmatprep.subr.bf16.mxu1 %v2125_v15 }
  0x72   : >> { %1877 = vmatpush3.bf16.msra.mxu0 %v2053_v22 }
  0x73   : >> { %1897 = vmatpush3.bf16.msra.mxu1 %v2054_v23  ;;  %1878 = vmatprep.subr.bf16.mxu0 %v2125_v15 }
  0x74   : >> { %1898 = vmatprep.subr.bf16.mxu1 %v2125_v15 }
  0x76   : >> { %1879 = vmatpush3.bf16.msra.mxu0 %v2055_v24 }
  0x77   : >> { %1899 = vmatpush3.bf16.msra.mxu1 %v2056_v25  ;;  %1880 = vmatprep.subr.bf16.mxu0 %v2125_v15 }
  0x78   : >> { %1900 = vmatprep.subr.bf16.mxu1 %v2125_v15 }
  0x7a   : >> { %1881 = vmatpush3.bf16.msra.mxu0 %v2057_v27 }
  0x7b   : >> { %1901 = vmatpush3.bf16.msra.mxu1 %v2058_v28  ;;  %1906 = vmatprep.subr.bf16.mxu0 %v2125_v15 }
  0x7c   : >> { %1926 = vmatprep.subr.bf16.mxu1 %v2125_v15 }
  0x7d   : >> { %1883 = vmatmul.mubr.bf16.vlgmr.msra.gmra.mxu0 %v2328_v48  ;;  %v2076_v48 = vld [vmem:[%s2592_s3 + $0x238] sm:$0xff]  }
  0x7e   : >> { %1907 = vmatpush3.bf16.msra.mxu0 %v2059_v30  ;;  %1903 = vmatmul.mubr.bf16.vlgmr.msra.gmra.mxu1 %v664_v31 }
  0x7f   : >> { %1927 = vmatpush3.bf16.msra.mxu1 %v2060_v32  ;;  %1908 = vmatprep.subr.bf16.mxu0 %v2125_v15 }
  0x80   : >> { %1928 = vmatprep.subr.bf16.mxu1 %v2125_v15  ;;  %1922 = vmatprep.mubr.msk.bf16.mxu0 %vm2126_vm0, %v2125_v15 }
  0x81   : >> { %1942 = vmatprep.mubr.msk.bf16.mxu1 %vm2126_vm0, %v2125_v15 }
  0x82   : >> { %1909 = vmatpush3.bf16.msra.mxu0 %v2061_v33 }
  0x83   : >> { %1929 = vmatpush3.bf16.msra.mxu1 %v2062_v34  ;;  %1910 = vmatprep.subr.bf16.mxu0 %v2125_v15 }
  0x84   : >> { %1930 = vmatprep.subr.bf16.mxu1 %v2125_v15 }
  0x86   : >> { %1911 = vmatpush3.bf16.msra.mxu0 %v2063_v35 }
  0x87   : >> { %1931 = vmatpush3.bf16.msra.mxu1 %v2064_v37  ;;  %1912 = vmatprep.subr.bf16.mxu0 %v2125_v15 }
  0x88   : >> { %1932 = vmatprep.subr.bf16.mxu1 %v2125_v15 }
  0x8a   : >> { %1913 = vmatpush3.bf16.msra.mxu0 %v2065_v38 }
  0x8b   : >> { %1933 = vmatpush3.bf16.msra.mxu1 %v2066_v39  ;;  %1914 = vmatprep.subr.bf16.mxu0 %v2125_v15 }
  0x8c   : >> { %1934 = vmatprep.subr.bf16.mxu1 %v2125_v15 }
  0x8e   : >> { %1915 = vmatpush3.bf16.msra.mxu0 %v2067_v40 }
  0x8f   : >> { %1935 = vmatpush3.bf16.msra.mxu1 %v2068_v41  ;;  %1916 = vmatprep.subr.bf16.mxu0 %v2125_v15 }
  0x90   : >> { %1936 = vmatprep.subr.bf16.mxu1 %v2125_v15 }
  0x92   : >> { %1917 = vmatpush3.bf16.msra.mxu0 %v2069_v42 }
  0x93   : >> { %1937 = vmatpush3.bf16.msra.mxu1 %v2070_v43  ;;  %1918 = vmatprep.subr.bf16.mxu0 %v2125_v15 }
  0x94   : >> { %1938 = vmatprep.subr.bf16.mxu1 %v2125_v15 }
  0x96   : >> { %1919 = vmatpush3.bf16.msra.mxu0 %v2071_v44 }
  0x97   : >> { %1939 = vmatpush3.bf16.msra.mxu1 %v2072_v45  ;;  %1920 = vmatprep.subr.bf16.mxu0 %v2125_v15 }
  0x98   : >> { %1940 = vmatprep.subr.bf16.mxu1 %v2125_v15 }
  0x9a   : >> { %1921 = vmatpush3.bf16.msra.mxu0 %v2073_v46 }
  0x9b   : >> { %1941 = vmatpush3.bf16.msra.mxu1 %v2074_v47  ;;  %1946 = vmatprep.subr.bf16.mxu0 %v2125_v15 }
  0x9d   : >> { %1923 = vmatmul.mubr.bf16.vlgmr.msra.gmra.mxu0 %v1003_v18 }
  0x9e   : >> { %1947 = vmatpush3.bf16.msra.mxu0 %v2076_v48  ;;  %1943 = vmatmul.mubr.bf16.vlgmr.msra.gmra.mxu1 %v2391_v4 }
  0x9f   : >> { %1948 = vmatprep.subr.bf16.mxu0 %v2125_v15  ;;  %1962 = vmatprep.mubr.msk.bf16.mxu0 %vm2126_vm0, %v2125_v15 }
  0xa2   : >> { %1949 = vmatpush3.bf16.msra.mxu0 %v2077_v49 }
  0xa3   : >> { %1950 = vmatprep.subr.bf16.mxu0 %v2125_v15 }
  0xa6   : >> { %1951 = vmatpush3.bf16.msra.mxu0 %v2078_v36 }
  0xa7   : >> { %1952 = vmatprep.subr.bf16.mxu0 %v2125_v15 }
  0xaa   : >> { %1953 = vmatpush3.bf16.msra.mxu0 %v2079_v50 }
  0xab   : >> { %1954 = vmatprep.subr.bf16.mxu0 %v2125_v15 }
  0xae   : >> { %1955 = vmatpush3.bf16.msra.mxu0 %v2080_v51 }
  0xaf   : >> { %1956 = vmatprep.subr.bf16.mxu0 %v2125_v15 }
  0xb2   : >> { %1957 = vmatpush3.bf16.msra.mxu0 %v2081_v52 }
  0xb3   : >> { %1958 = vmatprep.subr.bf16.mxu0 %v2125_v15 }
  0xb6   : >> { %1959 = vmatpush3.bf16.msra.mxu0 %v2082_v53 }
  0xb7   : >> { %1960 = vmatprep.subr.bf16.mxu0 %v2125_v15 }
  0xba   : >> { %1961 = vmatpush3.bf16.msra.mxu0 %v2083_v54 }
  0xbd   : >> { %1963 = vmatmul.mubr.bf16.vlgmr.msra.gmra.mxu0 %v1007_v19 }
  0xfd   : >> { %v443_v55 = vpop.f32.mrf.mxu0 }
  0xfe   : >> { %v532_v56 = vpop.f32.mrf.mxu1 }
  0xff   : >> { %v533_v57 = vadd.f32 %v532_v56, %v443_v55  ;;  %v1804_v58 = vpop.f32.mrf.mxu0 }
 0x100   : >> { %v1824_v59 = vpop.f32.mrf.mxu1 }
 0x101   : >> { %v446_v61 = vpop.f32.mrf.mxu0 }
 0x102   : >> { %v535_v62 = vpop.f32.mrf.mxu1 }
 0x103   : >> { %v536_v63 = vadd.f32 %v535_v62, %v446_v61  ;;  %v1805_v0 = vpop.f32.mrf.mxu0 }
 0x104   : >> { %v1825_v1 = vpop.f32.mrf.mxu1 }
 0x11d   : >> { %v638_v2 = vpop.f32.mrf.mxu0 }
 0x11e   : >> { %v645_v3 = vadd.f32 %v638_v2, %v533_v57  ;;  %v764_v4 = vpop.f32.mrf.mxu1 }
 0x11f   : >> { %v1844_v15 = vpop.f32.mrf.mxu0 }
 0x120   : >> { %v771_v5 = vadd.f32 %v764_v4, %v645_v3  ;;  %v1864_v6 = vpop.f32.mrf.mxu1 }
 0x121   : >> { %v641_v60 = vpop.f32.mrf.mxu0 }
 0x122   : >> { %v646_v7 = vadd.f32 %v641_v60, %v536_v63  ;;  %v767_v8 = vpop.f32.mrf.mxu1 }
 0x123   : >> { %v1845_v9 = vpop.f32.mrf.mxu0 }
 0x124   : >> { %v772_v10 = vadd.f32 %v767_v8, %v646_v7  ;;  %v1865_v11 = vpop.f32.mrf.mxu1 }
 0x13d   : >> { %v873_v14 = vpop.f32.mrf.mxu0 }
 0x13e   : >> { %v981_v16 = vpop.f32.mrf.mxu1  ;;  %v880_v31 = vadd.f32 %v873_v14, %v771_v5 }
 0x13f   : >> { %v1884_v17 = vpop.f32.mrf.mxu0 }
 0x140   : >> { %v1904_v18 = vpop.f32.mrf.mxu1  ;;  %v988_v32 = vadd.f32 %v981_v16, %v880_v31 }
 0x141   : >> { %v876_v19 = vpop.f32.mrf.mxu0 }
 0x142   : >> { %v984_v20 = vpop.f32.mrf.mxu1  ;;  %v881_v33 = vadd.f32 %v876_v19, %v772_v10 }
 0x143   : >> { %v1885_v21 = vpop.f32.mrf.mxu0 }
 0x144   : >> { %v1905_v22 = vpop.f32.mrf.mxu1  ;;  %v989_v35 = vadd.f32 %v984_v20, %v881_v33 }
 0x15d   : >> { %v1107_v23 = vpop.f32.mrf.mxu0 }
 0x15e   : >> { %v1216_v24 = vpop.f32.mrf.mxu1  ;;  %v1114_v34 = vadd.f32 %v1107_v23, %v988_v32 }
 0x15f   : >> { %v1924_v25 = vpop.f32.mrf.mxu0 }
 0x160   : >> { %v1944_v26 = vpop.f32.mrf.mxu1  ;;  %v1223_v37 = vadd.f32 %v1216_v24, %v1114_v34 }
 0x161   : >> { %v1110_v27 = vpop.f32.mrf.mxu0 }
 0x162   : >> { %v1219_v28 = vpop.f32.mrf.mxu1  ;;  %v1115_v38 = vadd.f32 %v1110_v27, %v989_v35 }
 0x163   : >> { %v1925_v29 = vpop.f32.mrf.mxu0 }
 0x164   : >> { %v1945_v30 = vpop.f32.mrf.mxu1  ;;  %v1224_v42 = vadd.f32 %v1219_v28, %v1115_v38 }
 0x17d   : >> { %v1324_v39 = vpop.f32.mrf.mxu0 }
 0x17e   : >> { %v1331_v40 = vadd.f32 %v1324_v39, %v1223_v37 }
 0x17f   : >> { %v1964_v41 = vpop.f32.mrf.mxu0 }
 0x180   : >> { %1335 = vst [vmem:[%s1334_s19] sm:$0xff] %v1331_v40  ;;  %v1345_v46 = vmul.f32 %v1331_v40, %v1331_v40 }
 0x181   : >> { %v1327_v43 = vpop.f32.mrf.mxu0 }
 0x182   : >> { %v1332_v44 = vadd.f32 %v1327_v43, %v1224_v42 }
 0x183   : >> { %v1965_v45 = vpop.f32.mrf.mxu0 }
 0x184   : >> { %1336 = vst [vmem:[%s1334_s19 + $0x8] sm:$0xff] %v1332_v44  ;;  %v1337_v47 = vadd.f32 %v1332_v44, %v1331_v40  ;;  %v1346_v48 = vmul.f32 %v1332_v44, %v1332_v44 }
 0x186   : >> { %v1338_v49 = vrot.slane %v1337_v47, 4  ;;  %v1347_v36 = vadd.f32 %v1346_v48, %v1345_v46 }
 0x188   : >> { %v1339_v50 = vadd.f32 %v1338_v49, %v1337_v47  ;;  %v1348_v51 = vrot.slane %v1347_v36, 4 }
 0x18a   : >> { %v1340_v52 = vrot.slane %v1339_v50, 2  ;;  %v1349_v53 = vadd.f32 %v1348_v51, %v1347_v36 }
 0x18c   : >> { %v1341_v54 = vadd.f32 %v1340_v52, %v1339_v50  ;;  %v1350_v55 = vrot.slane %v1349_v53, 2 }
 0x18e   : >> { %v1342_v56 = vrot.slane %v1341_v54, 1  ;;  %v1351_v57 = vadd.f32 %v1350_v55, %v1349_v53 }
 0x190   : >> { %v1343_v58 = vadd.f32 %v1342_v56, %v1341_v54  ;;  %v1352_v59 = vrot.slane %v1351_v57, 1 }
 0x192   : >> { %v1344_v61 = vadd.f32 %v2118_v13, %v1343_v58   ;;  %v1353_v62 = vadd.f32 %v1352_v59, %v1351_v57  ;;  %290 = sbr.rel (!%p288_p5) target bundleno = 28 (0x1c), region = 116 }
 0x194   : >> { %v1354_v63 = vadd.f32 %v2114_v12, %v1353_v62   ;;  %v2600_v13 = vmov %v1344_v61  ;;  %1355 = vst [vmem:[%s2182_s9] sm:$0x1] (%p288_p5), %v1344_v61 }
 0x196   : >> { %v2599_v12 = vmov %v1354_v63  ;;  %1356 = vst [vmem:[%s2182_s9 + $0x1] sm:$0x1] (%p288_p5), %v1354_v63 }
 0x197 PF: > { %s16_s18 = sadd.s32 1, %s2106_s18  }
 0x198   : > { %p13_p6 = scmp.ge.s32.totalorder %s16_s18, 4  }
 0x19a   :  { %15 = sbr.rel (!%p13_p6) target bundleno = 1 (0x1), region = 127 }

</bundles_post_ra>
